<compile_context>
chip_gen: v6e
topology: v6e:2x2x1
jax: 0.10.0
libtpu: 0.0.40
codegen_flags: <defaults>
</compile_context>

<pallas_src>
import math
import functools

import jax
import jax.numpy as jnp
import numpy as np
from jax.experimental import pallas as pl
from jax.experimental.pallas import tpu as pltpu

EPS = 1e-5
_NEG_BIG = -1e30  # finite additive key-mask bias (avoids inf-inf -> NaN on empty rows)


# ---------------------------------------------------------------------------
# Kernel 1: depthwise conv (k=3, s=1, p=1, no bias) + channel LayerNorm
#           + 1x1 conv projection for q / k / v.  Grid over B.
#           Input arrives in the module's native (B, C, T) layout; outputs are
#           (B, T, C) slabs (lane-dense channels) for the attention kernel.
# ---------------------------------------------------------------------------
def _qkv_kernel(x_ref,
                dwq_ref, dwk_ref, dwv_ref,
                wq_ref, bq_ref, wk_ref, bk_ref, wv_ref, bv_ref,
                q_out, k_out, v_out):
    # (C, T) -> (T, C): one XLU transpose per batch element (replaces the wrapper
    # transpose + jnp.pad HBM round trips of the previous version).
    x = x_ref[0].T                                        # (T, C)
    zrow = jnp.zeros_like(x[:1])
    x_prev = jnp.concatenate([zrow, x[:-1]], axis=0)      # x[t-1], zero padded
    x_next = jnp.concatenate([x[1:], zrow], axis=0)       # x[t+1], zero padded

    def branch(dw_ref, w_ref, b_ref, out_ref):
        dw = dw_ref[...]                                  # (3, C) depthwise taps
        # depthwise conv1d, kernel 3, stride 1, padding 1, groups=C, no bias.
        # NOTE: the MaskedConv1D mask multiply is elided -- masked timesteps are
        # removed later by the attention kv-bias / final qx-mask, so the module
        # output is unchanged.
        y = x_prev * dw[0:1, :] + x * dw[1:2, :] + x_next * dw[2:3, :]
        # LayerNorm over channels (lane axis); affine is folded into w/b host-side.
        mu = jnp.mean(y, axis=-1, keepdims=True)
        r = y - mu
        y = r * jax.lax.rsqrt(jnp.mean(r * r, axis=-1, keepdims=True) + EPS)
        # 1x1 conv projection: (T, C) @ (C_in, C_out) + bias.
        w = w_ref[...]
        prec = jax.lax.Precision.HIGHEST if w.dtype == jnp.float32 else None
        y = jnp.dot(y.astype(w.dtype), w,
                    preferred_element_type=jnp.float32, precision=prec) + b_ref[...]
        out_ref[0] = y.astype(out_ref.dtype)

    branch(dwq_ref, wq_ref, bq_ref, q_out)
    branch(dwk_ref, wk_ref, bk_ref, k_out)
    branch(dwv_ref, wv_ref, bv_ref, v_out)


# ---------------------------------------------------------------------------
# Kernel 2: masked multi-head attention fused with the output 1x1 projection.
#           Grid over (B, head_groups); head-group axis is an 'arbitrary'
#           reduction into a (T, C) f32 VMEM accumulator.  Epilogue adds the
#           projection bias, applies the qx mask and writes (B, C, T) directly.
# ---------------------------------------------------------------------------
def _attn_proj_kernel(q_ref, k_ref, v_ref, mrow_ref, wproj_ref, bproj_ref,
                      o_ref, acc_ref, *, heads_per_group, head_dim):
    g = pl.program_id(1)

    @pl.when(g == 0)
    def _():
        acc_ref[...] = jnp.zeros_like(acc_ref)

    q = q_ref[0]                        # (T, GW) -- attention scale folded into w_q/b_q
    k = k_ref[0]                        # (T, GW)
    v = v_ref[0]                        # (T, GW)
    mrow = mrow_ref[0]                  # (1, T) float kv/qx mask
    kv_bias = jnp.where(mrow > 0.0, 0.0, _NEG_BIG)          # additive key mask
    wproj = wproj_ref[...]              # (GW, C) rows of the output projection
    prec = jax.lax.Precision.HIGHEST if q.dtype == jnp.float32 else None

    head_outs = []
    for i in range(heads_per_group):
        sl = slice(i * head_dim, (i + 1) * head_dim)
        # scores: contract on D directly (no materialized k.T)
        s = jax.lax.dot_general(q[:, sl], k[:, sl], (((1,), (1,)), ((), ())),
                                preferred_element_type=jnp.float32,
                                precision=prec)              # (T, T)
        s = s + kv_bias
        s = s - jnp.max(s, axis=-1, keepdims=True)
        e = jnp.exp(s)
        # exact normalization (approx reciprocal was the source of the mismatch)
        p = e / jnp.sum(e, axis=-1, keepdims=True)
        # masked keys have attention weight exactly 0, so no v*mask is needed
        head_outs.append(jnp.dot(p.astype(v.dtype), v[:, sl],
                                 preferred_element_type=jnp.float32,
                                 precision=prec))            # (T, D)

    o_grp = head_outs[0] if heads_per_group == 1 else jnp.concatenate(head_outs, axis=1)
    # single wide (T, GW) @ (GW, C) fused projection matmul per head group
    acc_ref[...] += jnp.dot(o_grp.astype(wproj.dtype), wproj,
                            preferred_element_type=jnp.float32, precision=prec)

    @pl.when(g == pl.num_programs(1) - 1)
    def _():
        # epilogue: bias + qx mask, emitted directly in (C, T) layout (XLU transpose)
        y_ct = acc_ref[...].T                                # (C, T)
        o_ref[0] = ((y_ct + bproj_ref[...]) * mrow).astype(o_ref.dtype)


# ---------------------------------------------------------------------------
# Head grouping: make G*D fill the MXU lane width of the current chip
# (256 on v6e/v7x, 128 on older TPUs) when a divisor of n_head allows it,
# else take all heads (block width == C, always a legal full-dim block).
# ---------------------------------------------------------------------------
def _mxu_lane_target():
    try:
        kind = jax.devices()[0].device_kind.lower()
    except Exception:
        return 128
    if "tpu" not in kind:
        return 128
    for tag in ("v2", "v3", "v4", "v5"):
        if tag in kind:
            return 128
    return 256  # v6e / v7x: 256-wide MXU


def _heads_per_group(n_head, head_dim, lane_target):
    for lt in (lane_target, 128):
        upper = max(1, lt // max(head_dim, 1))
        for G in range(min(n_head, upper), 0, -1):
            if n_head % G == 0 and (G * head_dim) % lt == 0:
                return G
    return n_head


# ---------------------------------------------------------------------------
# Wrapper
# ---------------------------------------------------------------------------
def masked_mhca_forward(x, mask, params, n_head, compute_dtype=None):
    """x: (B, C, T), mask: (B, 1, T) bool -> (out (B, C, T), qx_mask (B, 1, T) bool).

    compute_dtype=jnp.bfloat16 stores q/k/v slabs and MXU operands in bf16
    (f32 accumulation); default (None) keeps everything in the input dtype.
    """
    B, C, T = x.shape
    assert C % n_head == 0
    D = C // n_head
    scale = 1.0 / math.sqrt(D)
    dt = x.dtype
    cdt = jnp.dtype(compute_dtype) if compute_dtype is not None else jnp.dtype(dt)

    m_row = mask.astype(jnp.float32)                         # (B, 1, T)

    # Fold the LayerNorm affine (and the attention scale for q) into the 1x1 convs:
    #   (y*g + beta) @ w + b  ==  y @ (g^T * w) + (beta @ w + b)
    def fold(w, b, g, beta, s=1.0):
        w_eff = (w * jnp.reshape(g, (-1, 1))) * s
        b_eff = (jnp.reshape(beta, (1, -1)) @ w + b) * s
        return w_eff.astype(cdt), b_eff.astype(jnp.float32)

    w_q, b_q = fold(params["w_q"], params["b_q"], params["ln_q_g"], params["ln_q_b"], scale)
    w_k, b_k = fold(params["w_k"], params["b_k"], params["ln_k_g"], params["ln_k_b"])
    w_v, b_v = fold(params["w_v"], params["b_v"], params["ln_v_g"], params["ln_v_b"])
    w_proj = params["w_proj"].astype(cdt)
    b_proj = jnp.reshape(params["b_proj"], (C, 1)).astype(jnp.float32)

    cp = dict(vmem_limit_bytes=48 * 1024 * 1024)
    inv = lambda shape: pl.BlockSpec(shape, lambda b: (0,) * len(shape))

    # ---- q / k / v path --------------------------------------------------
    q_btc, k_btc, v_btc = pl.pallas_call(
        _qkv_kernel,
        out_shape=[jax.ShapeDtypeStruct((B, T, C), cdt)] * 3,
        grid=(B,),
        in_specs=[
            pl.BlockSpec((1, C, T), lambda b: (b, 0, 0)),    # x, native (B,C,T)
            inv((3, C)), inv((3, C)), inv((3, C)),           # depthwise taps
            inv((C, C)), inv((1, C)),                        # w_q', b_q' (LN+scale folded)
            inv((C, C)), inv((1, C)),                        # w_k', b_k'
            inv((C, C)), inv((1, C)),                        # w_v', b_v'
        ],
        out_specs=[pl.BlockSpec((1, T, C), lambda b: (b, 0, 0))] * 3,
        compiler_params=pltpu.CompilerParams(dimension_semantics=("parallel",), **cp),
    )(x, params["dw_q"], params["dw_k"], params["dw_v"],
      w_q, b_q, w_k, b_k, w_v, b_v)

    # ---- attention + fused output projection -----------------------------
    G = _heads_per_group(n_head, D, _mxu_lane_target())
    n_groups = n_head // G
    GW = G * D

    out = pl.pallas_call(
        functools.partial(_attn_proj_kernel, heads_per_group=G, head_dim=D),
        out_shape=jax.ShapeDtypeStruct((B, C, T), dt),
        grid=(B, n_groups),
        in_specs=[
            pl.BlockSpec((1, T, GW), lambda b, g: (b, 0, g)),  # q (head group)
            pl.BlockSpec((1, T, GW), lambda b, g: (b, 0, g)),  # k
            pl.BlockSpec((1, T, GW), lambda b, g: (b, 0, g)),  # v
            pl.BlockSpec((1, 1, T), lambda b, g: (b, 0, 0)),   # kv/qx mask row
            pl.BlockSpec((GW, C), lambda b, g: (g, 0)),        # W_proj rows of group
            pl.BlockSpec((C, 1), lambda b, g: (0, 0)),         # proj bias (column)
        ],
        out_specs=pl.BlockSpec((1, C, T), lambda b, g: (b, 0, 0)),
        scratch_shapes=[pltpu.VMEM((T, C), jnp.float32)],
        compiler_params=pltpu.CompilerParams(
            dimension_semantics=("parallel", "arbitrary"), **cp),
    )(q_btc, k_btc, v_btc, m_row, w_proj, b_proj)

    qx_mask = mask                                            # stride = 1 -> unchanged
    return out, qx_mask


# ---------------------------------------------------------------------------
# Pure-JAX reference (mirrors the PyTorch forward) for a sanity check.
# ---------------------------------------------------------------------------
def _reference(x, mask, params, n_head):
    B, C, T = x.shape
    D = C // n_head
    scale = 1.0 / math.sqrt(D)
    hp = jax.lax.Precision.HIGHEST
    m = mask.astype(x.dtype)                                  # (B, 1, T)
    mt = jnp.transpose(m, (0, 2, 1))                          # (B, T, 1)
    x_btc = jnp.transpose(x, (0, 2, 1))                       # (B, T, C)
    xpad = jnp.pad(x_btc, ((0, 0), (1, 1), (0, 0)))

    def dw_ln_proj(dw, g, b, w, bias):
        y = xpad[:, 0:T] * dw[0] + xpad[:, 1:T + 1] * dw[1] + xpad[:, 2:T + 2] * dw[2]
        y = y * mt
        mu = jnp.mean(y, axis=-1, keepdims=True)
        r = y - mu
        sig = jnp.mean(r * r, axis=-1, keepdims=True)
        y = r / jnp.sqrt(sig + EPS) * g + b
        return jnp.einsum("btc,cd->btd", y, w, precision=hp) + bias

    q = dw_ln_proj(params["dw_q"], params["ln_q_g"], params["ln_q_b"], params["w_q"], params["b_q"])
    k = dw_ln_proj(params["dw_k"], params["ln_k_g"], params["ln_k_b"], params["w_k"], params["b_k"])
    v = dw_ln_proj(params["dw_v"], params["ln_v_g"], params["ln_v_b"], params["w_v"], params["b_v"])
    heads = lambda a: jnp.transpose(a.reshape(B, T, n_head, D), (0, 2, 1, 3))
    q, k, v = heads(q), heads(k), heads(v)
    att = jnp.einsum("bhqd,bhkd->bhqk", q * scale, k, precision=hp)
    att = jnp.where(m[:, :, None, :] > 0, att, -jnp.inf)
    att = jax.nn.softmax(att, axis=-1)
    out = jnp.einsum("bhqk,bhkd->bhqd", att, v * mt[:, None], precision=hp)
    out = jnp.transpose(out, (0, 2, 1, 3)).reshape(B, T, C)
    out = jnp.einsum("btc,cd->btd", out, params["w_proj"], precision=hp) + params["b_proj"]
    out = out * mt
    return jnp.transpose(out, (0, 2, 1))


if __name__ == "__main__":
    B, C, T, n_head = 2, 32, 16, 4   # n_embd=32, n_channels=8

    key = jax.random.PRNGKey(0)
    keys = jax.random.split(key, 20)

    # Deterministic synthetic parameters (shapes from MaskedMHCA.__init__).
    # Depthwise conv weights: torch (C, 1, 3) -> stored here as (3, C).
    # 1x1 conv weights: torch (C_out, C_in, 1) -> stored here as (C_in, C_out).
    params = {
        "dw_q": jax.random.normal(keys[0], (3, C), jnp.float32) * 0.2,
        "dw_k": jax.random.normal(keys[1], (3, C), jnp.float32) * 0.2,
        "dw_v": jax.random.normal(keys[2], (3, C), jnp.float32) * 0.2,
        "ln_q_g": 1.0 + 0.1 * jax.random.normal(keys[3], (1, C), jnp.float32),
        "ln_q_b": 0.05 * jax.random.normal(keys[4], (1, C), jnp.float32),
        "ln_k_g": 1.0 + 0.1 * jax.random.normal(keys[5], (1, C), jnp.float32),
        "ln_k_b": 0.05 * jax.random.normal(keys[6], (1, C), jnp.float32),
        "ln_v_g": 1.0 + 0.1 * jax.random.normal(keys[7], (1, C), jnp.float32),
        "ln_v_b": 0.05 * jax.random.normal(keys[8], (1, C), jnp.float32),
        "w_q": jax.random.normal(keys[9], (C, C), jnp.float32) / math.sqrt(C),
        "b_q": 0.05 * jax.random.normal(keys[10], (1, C), jnp.float32),
        "w_k": jax.random.normal(keys[11], (C, C), jnp.float32) / math.sqrt(C),
        "b_k": 0.05 * jax.random.normal(keys[12], (1, C), jnp.float32),
        "w_v": jax.random.normal(keys[13], (C, C), jnp.float32) / math.sqrt(C),
        "b_v": 0.05 * jax.random.normal(keys[14], (1, C), jnp.float32),
        "w_proj": jax.random.normal(keys[15], (C, C), jnp.float32) / math.sqrt(C),
        "b_proj": 0.05 * jax.random.normal(keys[16], (1, C), jnp.float32),
    }

    x = jax.random.normal(keys[17], (B, C, T), jnp.float32)
    lengths = jnp.array([T, 10])
    mask = jnp.arange(T)[None, None, :] < lengths[:, None, None]      # (B, 1, T) bool

    ref = _reference(x, mask, params, n_head)

    # f32 path (exact): must match the reference tightly.
    out, qx_mask = masked_mhca_forward(x, mask, params, n_head)
    out = jax.block_until_ready(out)
    np.testing.assert_allclose(np.asarray(out), np.asarray(ref), rtol=2e-3, atol=2e-3)
    assert out.shape == (B, C, T) and qx_mask.shape == (B, 1, T)

    # bf16 fast path (MXU-native operands, f32 accumulation): loose smoke check.
    out_bf, _ = masked_mhca_forward(x, mask, params, n_head, compute_dtype=jnp.bfloat16)
    out_bf = jax.block_until_ready(out_bf)
    np.testing.assert_allclose(np.asarray(out_bf), np.asarray(ref), rtol=5e-2, atol=5e-2)

    print("KERNEL_OK")
</pallas_src>

<mosaic_0001>
module attributes {stable_mosaic.version = 11 : i64} {
  func.func @_qkv_kernel(%arg0: i32, %arg1: memref<1x32x16xf32, #tpu.memory_space<vmem>>, %arg2: memref<3x32xf32, #tpu.memory_space<vmem>>, %arg3: memref<3x32xf32, #tpu.memory_space<vmem>>, %arg4: memref<3x32xf32, #tpu.memory_space<vmem>>, %arg5: memref<32x32xf32, #tpu.memory_space<vmem>>, %arg6: memref<1x32xf32, #tpu.memory_space<vmem>>, %arg7: memref<32x32xf32, #tpu.memory_space<vmem>>, %arg8: memref<1x32xf32, #tpu.memory_space<vmem>>, %arg9: memref<32x32xf32, #tpu.memory_space<vmem>>, %arg10: memref<1x32xf32, #tpu.memory_space<vmem>>, %arg11: memref<1x16x32xf32, #tpu.memory_space<vmem>>, %arg12: memref<1x16x32xf32, #tpu.memory_space<vmem>>, %arg13: memref<1x16x32xf32, #tpu.memory_space<vmem>>) attributes {dimension_semantics = [#tpu.dimension_semantics<parallel>], iteration_bounds = array<i64: 2>, scalar_prefetch = 0 : i64, scratch_operands = 0 : i64, tpu.core_type = #tpu.core_type<tc>, window_params = [{transform_indices = @transform_0, window_bounds = array<i64: 1, 32, 16>}, {pipeline_mode = #tpu.pipeline_mode<synchronous>, transform_indices = @transform_1, window_bounds = array<i64: 3, 32>}, {pipeline_mode = #tpu.pipeline_mode<synchronous>, transform_indices = @transform_2, window_bounds = array<i64: 3, 32>}, {pipeline_mode = #tpu.pipeline_mode<synchronous>, transform_indices = @transform_3, window_bounds = array<i64: 3, 32>}, {pipeline_mode = #tpu.pipeline_mode<synchronous>, transform_indices = @transform_4, window_bounds = array<i64: 32, 32>}, {pipeline_mode = #tpu.pipeline_mode<synchronous>, transform_indices = @transform_5, window_bounds = array<i64: 1, 32>}, {pipeline_mode = #tpu.pipeline_mode<synchronous>, transform_indices = @transform_6, window_bounds = array<i64: 32, 32>}, {pipeline_mode = #tpu.pipeline_mode<synchronous>, transform_indices = @transform_7, window_bounds = array<i64: 1, 32>}, {pipeline_mode = #tpu.pipeline_mode<synchronous>, transform_indices = @transform_8, window_bounds = array<i64: 32, 32>}, {pipeline_mode = #tpu.pipeline_mode<synchronous>, transform_indices = @transform_9, window_bounds = array<i64: 1, 32>}, {transform_indices = @transform_10, window_bounds = array<i64: 1, 16, 32>}, {transform_indices = @transform_11, window_bounds = array<i64: 1, 16, 32>}, {transform_indices = @transform_12, window_bounds = array<i64: 1, 16, 32>}]} {
    %c0 = arith.constant 0 : index
    %c0_0 = arith.constant 0 : index
    %c0_1 = arith.constant 0 : index
    %0 = vector.load %arg1[%c0, %c0_0, %c0_1] : memref<1x32x16xf32, #tpu.memory_space<vmem>>, vector<1x32x16xf32>
    %1 = vector.shape_cast %0 : vector<1x32x16xf32> to vector<32x16xf32>
    %2 = tpu.transpose %1, [1, 0] : vector<32x16xf32> -> vector<16x32xf32>
    %cst = arith.constant 0.000000e+00 : f32
    %3 = vector.broadcast %cst : f32 to vector<1x32xf32>
    %4 = vector.extract_strided_slice %2 {offsets = [0, 0], sizes = [15, 32], strides = [1, 1]} : vector<16x32xf32> to vector<15x32xf32>
    %5 = tpu.concatenate %3, %4 in 0 : vector<1x32xf32>, vector<15x32xf32> -> vector<16x32xf32>
    %6 = vector.extract_strided_slice %2 {offsets = [1, 0], sizes = [15, 32], strides = [1, 1]} : vector<16x32xf32> to vector<15x32xf32>
    %7 = tpu.concatenate %6, %3 in 0 : vector<15x32xf32>, vector<1x32xf32> -> vector<16x32xf32>
    %c0_2 = arith.constant 0 : index
    %c0_3 = arith.constant 0 : index
    %8 = vector.load %arg2[%c0_2, %c0_3] : memref<3x32xf32, #tpu.memory_space<vmem>>, vector<3x32xf32>
    %9 = vector.extract_strided_slice %8 {offsets = [0, 0], sizes = [1, 32], strides = [1, 1]} : vector<3x32xf32> to vector<1x32xf32>
    %10 = vector.broadcast %9 : vector<1x32xf32> to vector<16x32xf32>
    %11 = arith.mulf %5, %10 : vector<16x32xf32>
    %12 = vector.extract_strided_slice %8 {offsets = [1, 0], sizes = [1, 32], strides = [1, 1]} : vector<3x32xf32> to vector<1x32xf32>
    %13 = vector.broadcast %12 : vector<1x32xf32> to vector<16x32xf32>
    %14 = arith.mulf %2, %13 : vector<16x32xf32>
    %15 = arith.addf %11, %14 : vector<16x32xf32>
    %16 = vector.extract_strided_slice %8 {offsets = [2, 0], sizes = [1, 32], strides = [1, 1]} : vector<3x32xf32> to vector<1x32xf32>
    %17 = vector.broadcast %16 : vector<1x32xf32> to vector<16x32xf32>
    %18 = arith.mulf %7, %17 : vector<16x32xf32>
    %19 = arith.addf %15, %18 : vector<16x32xf32>
    %cst_4 = arith.constant dense<0.000000e+00> : vector<16xf32>
    %20 = vector.multi_reduction <add>, %19, %cst_4 [1] : vector<16x32xf32> to vector<16xf32>
    %21 = vector.shape_cast %20 : vector<16xf32> to vector<16x1xf32>
    %cst_5 = arith.constant 3.200000e+01 : f32
    %22 = vector.broadcast %cst_5 : f32 to vector<16x1xf32>
    %23 = arith.divf %21, %22 : vector<16x1xf32>
    %24 = vector.broadcast %23 : vector<16x1xf32> to vector<16x32xf32>
    %25 = arith.subf %19, %24 : vector<16x32xf32>
    %26 = arith.mulf %25, %25 : vector<16x32xf32>
    %cst_6 = arith.constant dense<0.000000e+00> : vector<16xf32>
    %27 = vector.multi_reduction <add>, %26, %cst_6 [1] : vector<16x32xf32> to vector<16xf32>
    %28 = vector.shape_cast %27 : vector<16xf32> to vector<16x1xf32>
    %cst_7 = arith.constant 3.200000e+01 : f32
    %29 = vector.broadcast %cst_7 : f32 to vector<16x1xf32>
    %30 = arith.divf %28, %29 : vector<16x1xf32>
    %cst_8 = arith.constant 9.99999974E-6 : f32
    %31 = vector.broadcast %cst_8 : f32 to vector<16x1xf32>
    %32 = arith.addf %30, %31 : vector<16x1xf32>
    %33 = math.rsqrt %32 : vector<16x1xf32>
    %34 = vector.broadcast %33 : vector<16x1xf32> to vector<16x32xf32>
    %35 = arith.mulf %25, %34 : vector<16x32xf32>
    %c0_9 = arith.constant 0 : index
    %c0_10 = arith.constant 0 : index
    %36 = vector.load %arg5[%c0_9, %c0_10] : memref<32x32xf32, #tpu.memory_space<vmem>>, vector<32x32xf32>
    %cst_11 = arith.constant dense<0.000000e+00> : vector<16x32xf32>
    %37 = tpu.matmul %35, %36, %cst_11 {dimension_numbers = #tpu.dot_dimension_numbers<[1], [0], [0], [1], [0, 0, 1, 1], [], []>, precision = #tpu.contract_precision<fp32>} : vector<16x32xf32>, vector<32x32xf32>, vector<16x32xf32> -> vector<16x32xf32>
    %c0_12 = arith.constant 0 : index
    %c0_13 = arith.constant 0 : index
    %38 = vector.load %arg6[%c0_12, %c0_13] : memref<1x32xf32, #tpu.memory_space<vmem>>, vector<1x32xf32>
    %39 = vector.broadcast %38 : vector<1x32xf32> to vector<16x32xf32>
    %40 = arith.addf %37, %39 : vector<16x32xf32>
    %c0_14 = arith.constant 0 : index
    %c0_15 = arith.constant 0 : index
    %c0_16 = arith.constant 0 : index
    %41 = vector.load %arg11[%c0_14, %c0_15, %c0_16] : memref<1x16x32xf32, #tpu.memory_space<vmem>>, vector<1x16x32xf32>
    %42 = vector.shape_cast %41 : vector<1x16x32xf32> to vector<16x32xf32>
    %43 = vector.shape_cast %40 : vector<16x32xf32> to vector<1x16x32xf32>
    tpu.vector_store %arg11[%c0_14, %c0_15, %c0_16], %43 {strides = array<i32>} : memref<1x16x32xf32, #tpu.memory_space<vmem>>, vector<1x16x32xf32>,
    %c0_17 = arith.constant 0 : index
    %c0_18 = arith.constant 0 : index
    %44 = vector.load %arg3[%c0_17, %c0_18] : memref<3x32xf32, #tpu.memory_space<vmem>>, vector<3x32xf32>
    %45 = vector.extract_strided_slice %44 {offsets = [0, 0], sizes = [1, 32], strides = [1, 1]} : vector<3x32xf32> to vector<1x32xf32>
    %46 = vector.broadcast %45 : vector<1x32xf32> to vector<16x32xf32>
    %47 = arith.mulf %5, %46 : vector<16x32xf32>
    %48 = vector.extract_strided_slice %44 {offsets = [1, 0], sizes = [1, 32], strides = [1, 1]} : vector<3x32xf32> to vector<1x32xf32>
    %49 = vector.broadcast %48 : vector<1x32xf32> to vector<16x32xf32>
    %50 = arith.mulf %2, %49 : vector<16x32xf32>
    %51 = arith.addf %47, %50 : vector<16x32xf32>
    %52 = vector.extract_strided_slice %44 {offsets = [2, 0], sizes = [1, 32], strides = [1, 1]} : vector<3x32xf32> to vector<1x32xf32>
    %53 = vector.broadcast %52 : vector<1x32xf32> to vector<16x32xf32>
    %54 = arith.mulf %7, %53 : vector<16x32xf32>
    %55 = arith.addf %51, %54 : vector<16x32xf32>
    %cst_19 = arith.constant dense<0.000000e+00> : vector<16xf32>
    %56 = vector.multi_reduction <add>, %55, %cst_19 [1] : vector<16x32xf32> to vector<16xf32>
    %57 = vector.shape_cast %56 : vector<16xf32> to vector<16x1xf32>
    %cst_20 = arith.constant 3.200000e+01 : f32
    %58 = vector.broadcast %cst_20 : f32 to vector<16x1xf32>
    %59 = arith.divf %57, %58 : vector<16x1xf32>
    %60 = vector.broadcast %59 : vector<16x1xf32> to vector<16x32xf32>
    %61 = arith.subf %55, %60 : vector<16x32xf32>
    %62 = arith.mulf %61, %61 : vector<16x32xf32>
    %cst_21 = arith.constant dense<0.000000e+00> : vector<16xf32>
    %63 = vector.multi_reduction <add>, %62, %cst_21 [1] : vector<16x32xf32> to vector<16xf32>
    %64 = vector.shape_cast %63 : vector<16xf32> to vector<16x1xf32>
    %cst_22 = arith.constant 3.200000e+01 : f32
    %65 = vector.broadcast %cst_22 : f32 to vector<16x1xf32>
    %66 = arith.divf %64, %65 : vector<16x1xf32>
    %cst_23 = arith.constant 9.99999974E-6 : f32
    %67 = vector.broadcast %cst_23 : f32 to vector<16x1xf32>
    %68 = arith.addf %66, %67 : vector<16x1xf32>
    %69 = math.rsqrt %68 : vector<16x1xf32>
    %70 = vector.broadcast %69 : vector<16x1xf32> to vector<16x32xf32>
    %71 = arith.mulf %61, %70 : vector<16x32xf32>
    %c0_24 = arith.constant 0 : index
    %c0_25 = arith.constant 0 : index
    %72 = vector.load %arg7[%c0_24, %c0_25] : memref<32x32xf32, #tpu.memory_space<vmem>>, vector<32x32xf32>
    %cst_26 = arith.constant dense<0.000000e+00> : vector<16x32xf32>
    %73 = tpu.matmul %71, %72, %cst_26 {dimension_numbers = #tpu.dot_dimension_numbers<[1], [0], [0], [1], [0, 0, 1, 1], [], []>, precision = #tpu.contract_precision<fp32>} : vector<16x32xf32>, vector<32x32xf32>, vector<16x32xf32> -> vector<16x32xf32>
    %c0_27 = arith.constant 0 : index
    %c0_28 = arith.constant 0 : index
    %74 = vector.load %arg8[%c0_27, %c0_28] : memref<1x32xf32, #tpu.memory_space<vmem>>, vector<1x32xf32>
    %75 = vector.broadcast %74 : vector<1x32xf32> to vector<16x32xf32>
    %76 = arith.addf %73, %75 : vector<16x32xf32>
    %c0_29 = arith.constant 0 : index
    %c0_30 = arith.constant 0 : index
    %c0_31 = arith.constant 0 : index
    %77 = vector.load %arg12[%c0_29, %c0_30, %c0_31] : memref<1x16x32xf32, #tpu.memory_space<vmem>>, vector<1x16x32xf32>
    %78 = vector.shape_cast %77 : vector<1x16x32xf32> to vector<16x32xf32>
    %79 = vector.shape_cast %76 : vector<16x32xf32> to vector<1x16x32xf32>
    tpu.vector_store %arg12[%c0_29, %c0_30, %c0_31], %79 {strides = array<i32>} : memref<1x16x32xf32, #tpu.memory_space<vmem>>, vector<1x16x32xf32>,
    %c0_32 = arith.constant 0 : index
    %c0_33 = arith.constant 0 : index
    %80 = vector.load %arg4[%c0_32, %c0_33] : memref<3x32xf32, #tpu.memory_space<vmem>>, vector<3x32xf32>
    %81 = vector.extract_strided_slice %80 {offsets = [0, 0], sizes = [1, 32], strides = [1, 1]} : vector<3x32xf32> to vector<1x32xf32>
    %82 = vector.broadcast %81 : vector<1x32xf32> to vector<16x32xf32>
    %83 = arith.mulf %5, %82 : vector<16x32xf32>
    %84 = vector.extract_strided_slice %80 {offsets = [1, 0], sizes = [1, 32], strides = [1, 1]} : vector<3x32xf32> to vector<1x32xf32>
    %85 = vector.broadcast %84 : vector<1x32xf32> to vector<16x32xf32>
    %86 = arith.mulf %2, %85 : vector<16x32xf32>
    %87 = arith.addf %83, %86 : vector<16x32xf32>
    %88 = vector.extract_strided_slice %80 {offsets = [2, 0], sizes = [1, 32], strides = [1, 1]} : vector<3x32xf32> to vector<1x32xf32>
    %89 = vector.broadcast %88 : vector<1x32xf32> to vector<16x32xf32>
    %90 = arith.mulf %7, %89 : vector<16x32xf32>
    %91 = arith.addf %87, %90 : vector<16x32xf32>
    %cst_34 = arith.constant dense<0.000000e+00> : vector<16xf32>
    %92 = vector.multi_reduction <add>, %91, %cst_34 [1] : vector<16x32xf32> to vector<16xf32>
    %93 = vector.shape_cast %92 : vector<16xf32> to vector<16x1xf32>
    %cst_35 = arith.constant 3.200000e+01 : f32
    %94 = vector.broadcast %cst_35 : f32 to vector<16x1xf32>
    %95 = arith.divf %93, %94 : vector<16x1xf32>
    %96 = vector.broadcast %95 : vector<16x1xf32> to vector<16x32xf32>
    %97 = arith.subf %91, %96 : vector<16x32xf32>
    %98 = arith.mulf %97, %97 : vector<16x32xf32>
    %cst_36 = arith.constant dense<0.000000e+00> : vector<16xf32>
    %99 = vector.multi_reduction <add>, %98, %cst_36 [1] : vector<16x32xf32> to vector<16xf32>
    %100 = vector.shape_cast %99 : vector<16xf32> to vector<16x1xf32>
    %cst_37 = arith.constant 3.200000e+01 : f32
    %101 = vector.broadcast %cst_37 : f32 to vector<16x1xf32>
    %102 = arith.divf %100, %101 : vector<16x1xf32>
    %cst_38 = arith.constant 9.99999974E-6 : f32
    %103 = vector.broadcast %cst_38 : f32 to vector<16x1xf32>
    %104 = arith.addf %102, %103 : vector<16x1xf32>
    %105 = math.rsqrt %104 : vector<16x1xf32>
    %106 = vector.broadcast %105 : vector<16x1xf32> to vector<16x32xf32>
    %107 = arith.mulf %97, %106 : vector<16x32xf32>
    %c0_39 = arith.constant 0 : index
    %c0_40 = arith.constant 0 : index
    %108 = vector.load %arg9[%c0_39, %c0_40] : memref<32x32xf32, #tpu.memory_space<vmem>>, vector<32x32xf32>
    %cst_41 = arith.constant dense<0.000000e+00> : vector<16x32xf32>
    %109 = tpu.matmul %107, %108, %cst_41 {dimension_numbers = #tpu.dot_dimension_numbers<[1], [0], [0], [1], [0, 0, 1, 1], [], []>, precision = #tpu.contract_precision<fp32>} : vector<16x32xf32>, vector<32x32xf32>, vector<16x32xf32> -> vector<16x32xf32>
    %c0_42 = arith.constant 0 : index
    %c0_43 = arith.constant 0 : index
    %110 = vector.load %arg10[%c0_42, %c0_43] : memref<1x32xf32, #tpu.memory_space<vmem>>, vector<1x32xf32>
    %111 = vector.broadcast %110 : vector<1x32xf32> to vector<16x32xf32>
    %112 = arith.addf %109, %111 : vector<16x32xf32>
    %c0_44 = arith.constant 0 : index
    %c0_45 = arith.constant 0 : index
    %c0_46 = arith.constant 0 : index
    %113 = vector.load %arg13[%c0_44, %c0_45, %c0_46] : memref<1x16x32xf32, #tpu.memory_space<vmem>>, vector<1x16x32xf32>
    %114 = vector.shape_cast %113 : vector<1x16x32xf32> to vector<16x32xf32>
    %115 = vector.shape_cast %112 : vector<16x32xf32> to vector<1x16x32xf32>
    tpu.vector_store %arg13[%c0_44, %c0_45, %c0_46], %115 {strides = array<i32>} : memref<1x16x32xf32, #tpu.memory_space<vmem>>, vector<1x16x32xf32>,
    return
  }
  func.func @transform_0(%arg0: i32) -> (i32, i32, i32) {
    %c0_i32 = arith.constant 0 : i32
    %c0_i32_0 = arith.constant 0 : i32
    %c0_i32_1 = arith.constant 0 : i32
    return %arg0, %c0_i32, %c0_i32_0 : i32, i32, i32
  }
  func.func @transform_1(%arg0: i32) -> (i32, i32) {
    %c0_i32 = arith.constant 0 : i32
    %c0_i32_0 = arith.constant 0 : i32
    %c0_i32_1 = arith.constant 0 : i32
    return %c0_i32, %c0_i32_0 : i32, i32
  }
  func.func @transform_2(%arg0: i32) -> (i32, i32) {
    %c0_i32 = arith.constant 0 : i32
    %c0_i32_0 = arith.constant 0 : i32
    %c0_i32_1 = arith.constant 0 : i32
    return %c0_i32, %c0_i32_0 : i32, i32
  }
  func.func @transform_3(%arg0: i32) -> (i32, i32) {
    %c0_i32 = arith.constant 0 : i32
    %c0_i32_0 = arith.constant 0 : i32
    %c0_i32_1 = arith.constant 0 : i32
    return %c0_i32, %c0_i32_0 : i32, i32
  }
  func.func @transform_4(%arg0: i32) -> (i32, i32) {
    %c0_i32 = arith.constant 0 : i32
    %c0_i32_0 = arith.constant 0 : i32
    %c0_i32_1 = arith.constant 0 : i32
    return %c0_i32, %c0_i32_0 : i32, i32
  }
  func.func @transform_5(%arg0: i32) -> (i32, i32) {
    %c0_i32 = arith.constant 0 : i32
    %c0_i32_0 = arith.constant 0 : i32
    %c0_i32_1 = arith.constant 0 : i32
    return %c0_i32, %c0_i32_0 : i32, i32
  }
  func.func @transform_6(%arg0: i32) -> (i32, i32) {
    %c0_i32 = arith.constant 0 : i32
    %c0_i32_0 = arith.constant 0 : i32
    %c0_i32_1 = arith.constant 0 : i32
    return %c0_i32, %c0_i32_0 : i32, i32
  }
  func.func @transform_7(%arg0: i32) -> (i32, i32) {
    %c0_i32 = arith.constant 0 : i32
    %c0_i32_0 = arith.constant 0 : i32
    %c0_i32_1 = arith.constant 0 : i32
    return %c0_i32, %c0_i32_0 : i32, i32
  }
  func.func @transform_8(%arg0: i32) -> (i32, i32) {
    %c0_i32 = arith.constant 0 : i32
    %c0_i32_0 = arith.constant 0 : i32
    %c0_i32_1 = arith.constant 0 : i32
    return %c0_i32, %c0_i32_0 : i32, i32
  }
  func.func @transform_9(%arg0: i32) -> (i32, i32) {
    %c0_i32 = arith.constant 0 : i32
    %c0_i32_0 = arith.constant 0 : i32
    %c0_i32_1 = arith.constant 0 : i32
    return %c0_i32, %c0_i32_0 : i32, i32
  }
  func.func @transform_10(%arg0: i32) -> (i32, i32, i32) {
    %c0_i32 = arith.constant 0 : i32
    %c0_i32_0 = arith.constant 0 : i32
    %c0_i32_1 = arith.constant 0 : i32
    return %arg0, %c0_i32, %c0_i32_0 : i32, i32, i32
  }
  func.func @transform_11(%arg0: i32) -> (i32, i32, i32) {
    %c0_i32 = arith.constant 0 : i32
    %c0_i32_0 = arith.constant 0 : i32
    %c0_i32_1 = arith.constant 0 : i32
    return %arg0, %c0_i32, %c0_i32_0 : i32, i32, i32
  }
  func.func @transform_12(%arg0: i32) -> (i32, i32, i32) {
    %c0_i32 = arith.constant 0 : i32
    %c0_i32_0 = arith.constant 0 : i32
    %c0_i32_1 = arith.constant 0 : i32
    return %arg0, %c0_i32, %c0_i32_0 : i32, i32, i32
  }
}

</mosaic_0001>

<bundles_post_ra>
// kernel: tpu_custom_call.1
= control target key start
LH: loop header
LB: loop body
LE: loop exit
PB: predicated region body
PF: predicated region fallthrough
CT: control target
= control target key end

     0   :  { %s3793_s0 = inlined_call_operand.vmem [shape: f32[2,32,16], index: 0, kind: input, shape index: {}]   ;;  %s3794_s1 = inlined_call_operand.hbm [shape: f32[3,32], index: 1, kind: input, shape index: {}]   ;;  %s3795_s2 = inlined_call_operand.hbm [shape: f32[3,32], index: 2, kind: input, shape index: {}]   ;;  %s3796_s3 = inlined_call_operand.vmem [shape: f32[3,32], index: 3, kind: input, shape index: {}]   ;;  %s3797_s4 = inlined_call_operand.vmem [shape: f32[32,32], index: 4, kind: input, shape index: {}]   ;;  %s3798_s5 = inlined_call_operand.vmem [shape: f32[1,32], index: 5, kind: input, shape index: {}]   ;;  %s3799_s6 = inlined_call_operand.vmem [shape: f32[32,32], index: 6, kind: input, shape index: {}]   ;;  %s3800_s7 = inlined_call_operand.vmem [shape: f32[1,32], index: 7, kind: input, shape index: {}]   ;;  %s3801_s8 = inlined_call_operand.vmem [shape: f32[32,32], index: 8, kind: input, shape index: {}]   ;;  %s3802_s9 = inlined_call_operand.vmem [shape: f32[1,32], index: 9, kind: input, shape index: {}]   ;;  %s3803_s10 = inlined_call_operand.hbm [shape: f32[2,16,32], index: 10, kind: output, shape index: {0}]   ;;  %s3804_s11 = inlined_call_operand.hbm [shape: f32[2,16,32], index: 11, kind: output, shape index: {1}]   ;;  %s3805_s12 = inlined_call_operand.hbm [shape: f32[2,16,32], index: 12, kind: output, shape index: {2}]  }
   0x1   :  { %3812 = sst [smem:[#allocation15_spill]] %s3793_s0 }
   0x2   :  { %3813 = sst [smem:[#allocation16_spill]] %s3794_s1 }
   0x3   :  { %3814 = sst [smem:[#allocation17_spill]] %s3795_s2 }
   0x4   :  { %3815 = sst [smem:[#allocation18_spill]] %s3796_s3 }
   0x5   :  { %3816 = sst [smem:[#allocation19_spill]] %s3797_s4 }
   0x6   :  { %18 = vsyncpa [#allocation3], 0 }
   0x7   :  { %19 = vsyncpa [#allocation6], 0 }
   0x8   :  { %20 = vsyncpa [#allocation4], 0 }
   0x9   :  { %22 = vsyncpa [#allocation4 + $0x1], 0 }
   0xa   :  { %23 = vsyncpa [#allocation9], 0 }
   0xb   :  { %25 = vsyncpa [#allocation9 + $0x1], 0  ;;  %s3171_s21 = smov 0   ;;  %s3173_s22 = smov 0  }
   0xc   :  { %s3175_s23 = smov 0   ;;  %s3177_s24 = smov 0  }
   0xd LB: > { %s3192_s25 = sadd.s32 4294967295, %s3097_s24   ;;  %s3809_s26 = sadd.s32 4294967294, %s3097_s24   ;;  %s3097_s24 = sphi %s3177_s24, %s3838_s24   ;;  %s3093_s23 = sphi %s3175_s23, %s3837_s23   ;;  %s3089_s22 = sphi %s3173_s22, %s3836_s22   ;;  %s3085_s21 = sphi %s3171_s21, %s3835_s21  }
   0xe   : > { %s3196_s27 = sadd.s32 1, %s3097_s24   ;;  %s253_s28 = sadd.s32 1, %s3093_s23 }
   0xf   : > { %s250_s29 = ssub.s32 %s3097_s24, %s3196_s27  ;;  %p263_p0 = scmp.ne.s32.totalorder %s3093_s23, %s3089_s22 }
  0x10   : > { %p251_p1 = scmp.eq.s32.totalorder %s250_s29, 0  ;;  %p264_p2 = scmp.eq.s32.totalorder %s3192_s25, 1 }
  0x11   : > { %p269_p3 = scmp.ne.s32.totalorder %s3089_s22, %s3085_s21  ;;  %p270_p4 = scmp.eq.s32.totalorder %s3809_s26, 1 }
  0x12   : > { %s3209_s30 = scalar_select %p251_p1, %s3093_s23, %s253_s28  }
  0x13   : > { %p3211_p5 = por %p264_p2, %p263_p0  ;;  %p3215_p6 = por %p270_p4, %p269_p3 }
  0x14   : > { %p2500_p7 = scmp.ge.s32.totalorder %s3097_s24, 1  ;;  %p329_p8 = scmp.lt.s32.totalorder %s3097_s24, 3 }
  0x15   : > { %s3817_s13 = scalar_select %p3211_p5, 1, 0 }
  0x16   : > { %s3818_s14 = scalar_select %p3215_p6, 1, 0 }
  0x17   : > { %p3806_p9 = scmp.eq.s32.totalorder %s3192_s25, 0  ;;  %p3222_p10 = pnand %p2500_p7, %p329_p8 }
  0x18   : > { %s3099_s16 = smov [#allocation2]   ;;  %s3100_s18 = smov [#allocation5]  }
  0x19   : > { %s3819_s15 = scalar_select %p3222_p10, 1, 0 }
  0x1a   : > { %s342_s17 = sshll.u32 %s3099_s16, 4  ;;  %p2850_p11 = pneg %p3222_p10  ;;  %s343_s17 = int_to_ptr.vmem [resolvable:$true] %s342_s17 }
  0x1b   : > { %s353_s19 = sshll.u32 %s3100_s18, 4  ;;  %s2932_s28 = scalar_lea.vmem %s343_s17, 64  ;;  %s354_s19 = int_to_ptr.vmem [resolvable:$true] %s353_s19 }
  0x1c   : > { %p3230_p12 = pnand %p3806_p9, %p2850_p11  ;;  %p2933_p0 = scmp.ne.s32.totalorder %s343_s17, %s2932_s28 }
  0x1d   : > { %p2940_p3 = scmp.lt.s32.totalorder %s343_s17, %s343_s17  ;;  %p2941_p4 = scmp.lt.s32.totalorder %s2932_s28, %s2932_s28 }
  0x1e   : > { %p2923_p13 = pneg %p3230_p12 }
  0x1f   : > { %p2942_p7 = por %p2941_p4, %p2940_p3 }
  0x20   : > { %p2935_p1 = pnand %p2933_p0, %p2923_p13 }
  0x22   : > { %p2936_p2 = pneg %p2935_p1 }
  0x24   : > { %p2943_p8 = pnand %p2942_p7, %p2936_p2 }
  0x26   : > { %2946 = shalt.err (!%p2943_p8)
}
  0x27   : > { %s3821_s1 = sld [smem:[#allocation16_spill]]  ;;  %s2958_s18 = scalar_lea.vmem %s354_s19, 64 }
  0x28   : > { %p2959_p11 = scmp.ne.s32.totalorder %s354_s19, %s2958_s18  ;;  %p2966_p0 = scmp.lt.s32.totalorder %s354_s19, %s354_s19 }
  0x29   : > { %p2967_p1 = scmp.lt.s32.totalorder %s2958_s18, %s2958_s18 }
  0x2a   : > { %p2961_p9 = pnand %p2959_p11, %p2923_p13 }
  0x2b   : > { %p2968_p5 = por %p2967_p1, %p2966_p0 }
  0x2c   : > { %p2962_p6 = pneg %p2961_p9 }
  0x2d   : > { %2853 = dma.hbm_to_vmem [thread:$0]  (!%p3230_p12), %s3821_s1, 64, %s343_s17, [#allocation3]  }
  0x2e   : > { %p2969_p10 = pnand %p2968_p5, %p2962_p6 }
  0x30   : > { %2972 = shalt.err (!%p2969_p10)
}
  0x31   : > { %s3822_s2 = sld [smem:[#allocation17_spill]]  ;;  %p3823_p2 = scmp.ne.s32.totalorder %s3819_s15, 0 }
  0x32   : > { %p3824_p3 = scmp.eq.s32.totalorder (!%p3823_p2), %s3192_s25, 0 }
  0x33   : > { %395 = sbr.rel (%p3823_p2) target bundleno = 813 (0x32d), region = 60 }
  0x37   : > { %2856 = dma.hbm_to_vmem [thread:$0]  (!%p3230_p12), %s3822_s2, 64, %s354_s19, [#allocation6]  }
  0x38   : > { %3068 = dma.done.wait (%p3824_p3), [#allocation3], 64   ;;  %p3825_p13 = pmov %p3824_p3 }
  0x39   : > { %p3826_p9 = pmov %p3824_p3 }
  0x3a   : > { %3070 = vsyncadd (%p3825_p13), [#allocation3], 4294967232 }
  0x3b   : > { %3072 = dma.done.wait (%p3826_p9), [#allocation6], 64   ;;  %p3827_p5 = pmov %p3824_p3 }
  0x3c   : > { %p451_p6 = scmp.lt.s32.totalorder %s3192_s25, 1  ;;  %s3828_s0 = sld [smem:[#allocation15_spill]]  ;;  %v509_v4 = vlaneseq  ;;  %v508_v10 = vld [vmem:[#allocation2] sm:$0x7]  ;;  %vm494_vm0 = vcmask 1040384   ;;  %vm501_vm1 = vcmask 1046528  }
  0x3d   : > { %3074 = vsyncadd (%p3827_p5), [#allocation6], 4294967232  ;;  %s3829_s3 = sld [smem:[#allocation18_spill]]  ;;  %v1106_v19 = vld [vmem:[#allocation5] sm:$0x7]  ;;  %vm531_vm2 = vcmask 261120  }
  0x3e   : > { %s452_s26 = scalar_select %p451_p6, %s3192_s25, 1  ;;  %v510_v5 = vshrl.u32 %v509_v4, 7 }
  0x3f   : > { %s3830_s4 = sld [smem:[#allocation19_spill]]  ;;  %s434_s16 = sand.u32 1, %s3089_s22  }
  0x40   : > { %s2526_s17 = sshll.u32 %s452_s26, 5  ;;  %v511_v6 = vsub.s32 0, %v510_v5  ;;  %v517_v7 = vsub.s32 1, %v510_v5  ;;  %v525_v9 = vsub.s32 2, %v510_v5  ;;  %s3653_s18 = sshll.u32 %s434_s16, 4 }
  0x41   : > { %s3656_s28 = sshll.u32 %s3192_s25, 8  ;;  %s436_s26 = scalar_lea.vmem [#allocation7], %s3653_s18 }
  0x42   : > { %s455_s20 = scalar_lea.vmem %s3828_s0, %s2526_s17  ;;  %v512_v13 = vrot.slane %v508_v10, %v511_v6  ;;  %v518_v16 = vrot.slane %v508_v10, %v517_v7  ;;  %v526_v23 = vrot.slane %v508_v10, %v525_v9  ;;  %v1110_v24 = vrot.slane %v1106_v19, %v511_v6  ;;  %s2322_s17 = sshll.u32 %s436_s26, 4  ;;  %s3666_s17 = int_to_ptr.vmem [resolvable:$true] %s2322_s17 }
  0x43   : > { %v456_v0 = vld [vmem:[%s455_s20] sm:$0xff]  ;;  %v457_v1 = vld [vmem:[%s455_s20 + $0x8] sm:$0xff]  ;;  %v458_v2 = vld [vmem:[%s455_s20 + $0x10] sm:$0xff]  ;;  %v1116_v31 = vrot.slane %v1106_v19, %v517_v7  ;;  %v1124_v32 = vrot.slane %v1106_v19, %v525_v9  ;;  %s3669_s29 = scalar_lea.sflag [#allocation4], %s434_s16  ;;  %s2973_s0 = scalar_lea.vmem %s3666_s17, 256 }
  0x44   : > { %460 = vxpose.xlu0.b32.start [1/4] (short) (narrow) %v456_v0, 16  ;;  %v459_v3 = vld [vmem:[%s455_s20 + $0x18] sm:$0xff]  ;;  %v1702_v8 = vld [vmem:[%s3829_s3] sm:$0x7]  ;;  %s3664_s20 = scalar_lea.hbm %s3803_s10, %s3656_s28  ;;  %p2974_p10 = scmp.ne.s32.totalorder %s3666_s17, %s2973_s0 }
  0x45   : > { %v1706_v12 = vrot.slane %v1702_v8, %v511_v6  ;;  %v1712_v15 = vrot.slane %v1702_v8, %v517_v7  ;;  %v1720_v18 = vrot.slane %v1702_v8, %v525_v9  ;;  %p3831_p12 = scmp.ne.s32.totalorder %s3817_s13, 0  ;;  %s3101_s1 = smov [#allocation7]  }
  0x46   : > { %s2977_s2 = sshll.u32 %s3101_s1, 4  ;;  %s2978_s2 = int_to_ptr.vmem [resolvable:$false] %s2977_s2 }
  0x47   : > { %p2975_p4 = pnand %p2974_p10, %p3831_p12  ;;  %s2979_s19 = scalar_lea.vmem %s2978_s2, 512 }
  0x48   : > { %461 = vxpose.xlu0.b32.cont [2/4] (short) (narrow) %v457_v1, 16  ;;  %p2980_p8 = scmp.lt.s32.totalorder %s3666_s17, %s2978_s2  ;;  %p2981_p11 = scmp.lt.s32.totalorder %s2979_s19, %s2973_s0 }
  0x49   : > { %p2976_p7 = pneg %p2975_p4 }
  0x4a   : > { %p2982_p0 = por %p2981_p11, %p2980_p8 }
  0x4c   : > { %462 = vxpose.xlu0.b32.cont [3/4] (short) (narrow) %v458_v2, 16  ;;  %p2983_p1 = pnand %p2982_p0, %p2976_p7 }
  0x50   : > { %463 = vxpose.xlu0.b32.end [4/4] (short) (narrow) %v459_v3, 16 }
  0xc0   : > { %v476_v11 = vpop.trf.xlu0 }
  0xc1   : > { %v495_v14 = vrot.slane %v476_v11, 7  ;;  %v502_v25 = vrot.slane %v476_v11, 1  ;;  %v1713_v28 = vmul.f32 %v1712_v15, %v476_v11  ;;  %v519_v29 = vmul.f32 %v518_v16, %v476_v11 }
  0xc2   : > { %v1117_v46 = vmul.f32 %v1116_v31, %v476_v11 }
  0xc3   : > { %v500_v17 = vsel %vm494_vm0, 0.0, %v495_v14 }
  0xc4   : > { %v477_v20 = vpop.trf.xlu0  ;;  %v1707_v21 = vmul.f32 %v1706_v12, %v500_v17  ;;  %v513_v22 = vmul.f32 %v512_v13, %v500_v17  ;;  %v1111_v41 = vmul.f32 %v1110_v24, %v500_v17 }
  0xc5   : > { %v496_v26 = vrot.slane %v477_v20, 7  ;;  %v503_v27 = vrot.slane %v477_v20, 1  ;;  %v520_v30 = vmul.f32 %v518_v16, %v477_v20  ;;  %v1118_v53 = vmul.f32 %v1116_v31, %v477_v20 }
  0xc6   : > { %v1715_v34 = vadd.f32 %v1713_v28, %v1707_v21  ;;  %v521_v38 = vadd.f32 %v519_v29, %v513_v22  ;;  %v1119_v52 = vadd.f32 %v1117_v46, %v1111_v41  ;;  %v1714_v59 = vmul.f32 %v1712_v15, %v477_v20 }
  0xc7   : > { %v504_v33 = vsel %vm501_vm1, %v502_v25, %v503_v27  ;;  %v497_v35 = vsel %vm494_vm0, %v495_v14, %v496_v26  ;;  %v507_v36 = vsel %vm501_vm1, %v503_v27, 0.0 }
  0xc8   : > { %v1721_v37 = vmul.f32 %v1720_v18, %v504_v33  ;;  %v527_v39 = vmul.f32 %v526_v23, %v504_v33  ;;  %v514_v40 = vmul.f32 %v512_v13, %v497_v35  ;;  %v528_v45 = vmul.f32 %v526_v23, %v507_v36 }
  0xc9   : > { %v1125_v47 = vmul.f32 %v1124_v32, %v504_v33  ;;  %v1112_v51 = vmul.f32 %v1110_v24, %v497_v35  ;;  %v1708_v57 = vmul.f32 %v1706_v12, %v497_v35  ;;  %v1126_v58 = vmul.f32 %v1124_v32, %v507_v36  ;;  %v562_v33 = vld [vmem:[%s3830_s4 + $0x18] sm:$0xff]  ;;  %v561_v35 = vld [vmem:[%s3830_s4 + $0x10] sm:$0xff] }
  0xca   : > { %v1723_v42 = vadd.f32 %v1721_v37, %v1715_v34  ;;  %v529_v43 = vadd.f32 %v527_v39, %v521_v38  ;;  %v522_v44 = vadd.f32 %v520_v30, %v514_v40  ;;  %v1722_v63 = vmul.f32 %v1720_v18, %v507_v36  ;;  %v560_v38 = vld [vmem:[%s3830_s4 + $0x8] sm:$0xff] }
  0xcb   : > { %v1127_v55 = vadd.f32 %v1125_v47, %v1119_v52  ;;  %v1120_v56 = vadd.f32 %v1118_v53, %v1112_v51  ;;  %v1716_v62 = vadd.f32 %v1714_v59, %v1708_v57  ;;  %v3313_v34 = vand.u32 4294901760, %v562_v33 }
  0xcc   : > { %v1725_v48 = vsel %vm531_vm2, %v1723_v42, 0.0  ;;  %v532_v49 = vsel %vm531_vm2, %v529_v43, 0.0  ;;  %v530_v50 = vadd.f32 %v528_v45, %v522_v44  ;;  %v3321_v37 = vand.u32 4294901760, %v561_v35 }
  0xcd   : > { %1726 = vadd.xlane.f32.xlu0 %v1725_v48  ;;  %533 = vadd.xlane.f32.xlu1 %v532_v49  ;;  %v1129_v60 = vsel %vm531_vm2, %v1127_v55, 0.0  ;;  %v1128_v61 = vadd.f32 %v1126_v58, %v1120_v56  ;;  %v1724_v1 = vadd.f32 %v1722_v63, %v1716_v62  ;;  %v3319_v36 = vsub.f32 %v562_v33, %v3313_v34 }
  0xce   : > { %v535_v54 = vsel %vm531_vm2, %v530_v50, 0.0  ;;  %2638 = vmatprep.subr.mxu0 %v3313_v34  ;;  %v3332_v40 = vsub.f32 %v561_v35, %v3321_v37  ;;  %v3334_v41 = vand.u32 4294901760, %v560_v38 }
  0xcf   : > { %v1132_v0 = vsel %vm531_vm2, %v1128_v61, 0.0  ;;  %v1728_v2 = vsel %vm531_vm2, %v1724_v1, 0.0  ;;  %2639 = vmatpush3.msra.mxu0 %v3313_v34  ;;  %v3329_v39 = vand.u32 4294901760, %v3319_v36 }
  0xd0   : > { %2640 = vmatprep.subr.mxu0 %v3321_v37  ;;  %v3344_v44 = vand.u32 4294901760, %v3332_v40  ;;  %v3347_v45 = vsub.f32 %v560_v38, %v3334_v41 }
  0xd1   : > { %536 = vadd.xlane.f32.xlu1 %v535_v54  ;;  %2641 = vmatpush3.msra.mxu0 %v3321_v37 }
  0xd2   : > { %2642 = vmatprep.subr.mxu0 %v3334_v41  ;;  %v700_v48 = vsub.f32 %v3332_v40, %v3344_v44  ;;  %v3356_v49 = vand.u32 4294901760, %v3347_v45 }
  0xd3   : > { %2643 = vmatpush3.msra.mxu0 %v3334_v41 }
  0xd4   : > { %v701_v51 = vand.u32 4294901760, %v700_v48  ;;  %v707_v52 = vsub.f32 %v3347_v45, %v3356_v49 }
  0xd5   : > { %1130 = vadd.xlane.f32.xlu1 %v1129_v60 }
  0xd6   : > { %v708_v54 = vand.u32 4294901760, %v707_v52 }
  0xd9   : > { %1133 = vadd.xlane.f32.xlu1 %v1132_v0 }
  0xdd   : > { %1729 = vadd.xlane.f32.xlu1 %v1728_v2 }
 0x156   : > { %v534_v3 = vpop.xlane.xlu1 %533  ;;  %v1727_v11 = vpop.xlane.xlu0 %1726 }
 0x157   : > { %v539_v4 = vmul.f32 0.03125, %v534_v3  ;;  %v1731_v15 = vmul.f32 0.03125, %v1727_v11 }
 0x159   : > { %v3280_v5 = vsub.f32 %v529_v43, %v539_v4  ;;  %v3294_v21 = vsub.f32 %v1723_v42, %v1731_v15  ;;  %v559_v42 = vld [vmem:[%s3830_s4] sm:$0xff]  ;;  %v693_v43 = vsub.f32 %v3319_v36, %v3329_v39 }
 0x15a   : > { %v537_v6 = vpop.xlane.xlu1 %536  ;;  %v3349_v46 = vand.u32 4294901760, %v559_v42 }
 0x15b   : > { %v540_v7 = vmul.f32 0.03125, %v537_v6  ;;  %v543_v8 = vmul.f32 %v3280_v5, %v3280_v5  ;;  %v1735_v29 = vmul.f32 %v3294_v21, %v3294_v21  ;;  %v694_v47 = vand.u32 4294901760, %v693_v43 }
 0x15c   : > { %2644 = vmatprep.subr.mxu0 %v3349_v46 }
 0x15d   : > { %v3284_v9 = vsub.f32 %v530_v50, %v540_v7  ;;  %v545_v10 = vsel %vm531_vm2, %v543_v8, 0.0  ;;  %v1737_v30 = vsel %vm531_vm2, %v1735_v29, 0.0  ;;  %v3359_v50 = vsub.f32 %v559_v42, %v3349_v46  ;;  %2645 = vmatpush3.msra.mxu0 %v3349_v46  ;;  %2649 = vmatprep.subr.mxu1 %v694_v47 }
 0x15e   : > { %546 = vadd.xlane.f32.xlu1 %v545_v10  ;;  %v1131_v12 = vpop.xlane.xlu1 %1130  ;;  %2660 = vmatprep.subr.mxu0 %v3319_v36 }
 0x15f   : > { %v1135_v13 = vmul.f32 0.03125, %v1131_v12  ;;  %v544_v14 = vmul.f32 %v3284_v9, %v3284_v9  ;;  %v3366_v53 = vand.u32 4294901760, %v3359_v50  ;;  %2650 = vmatpush3.msra.mxu1 %v694_v47 }
 0x160   : > { %2651 = vmatprep.subr.mxu1 %v701_v51 }
 0x161   : > { %v3289_v16 = vsub.f32 %v1127_v55, %v1135_v13  ;;  %v548_v17 = vsel %vm531_vm2, %v544_v14, 0.0  ;;  %v714_v55 = vsub.f32 %v3359_v50, %v3366_v53  ;;  %2652 = vmatpush3.msra.mxu1 %v701_v51  ;;  %v1158_v14 = vld [vmem:[%s3799_s6 + $0x18] sm:$0xff] }
 0x162   : > { %549 = vadd.xlane.f32.xlu1 %v548_v17  ;;  %v1134_v18 = vpop.xlane.xlu1 %1133  ;;  %2653 = vmatprep.subr.mxu1 %v708_v54 }
 0x163   : > { %v1136_v19 = vmul.f32 0.03125, %v1134_v18  ;;  %v1139_v20 = vmul.f32 %v3289_v16, %v3289_v16  ;;  %v715_v56 = vand.u32 4294901760, %v714_v55  ;;  %2654 = vmatpush3.msra.mxu1 %v708_v54  ;;  %v3385_v18 = vand.u32 4294901760, %v1158_v14 }
 0x165   : > { %v3296_v22 = vsub.f32 %v1128_v61, %v1136_v19  ;;  %v1141_v23 = vsel %vm531_vm2, %v1139_v20, 0.0  ;;  %2655 = vmatprep.subr.mxu1 %v715_v56  ;;  %v3404_v29 = vsub.f32 %v1158_v14, %v3385_v18 }
 0x166   : > { %1142 = vadd.xlane.f32.xlu1 %v1141_v23  ;;  %v1730_v24 = vpop.xlane.xlu1 %1729  ;;  %2656 = vmatpush3.msra.mxu1 %v715_v56  ;;  %v1156_v23 = vld [vmem:[%s3799_s6 + $0x8] sm:$0xff] }
 0x167   : > { %v1732_v25 = vmul.f32 0.03125, %v1730_v24  ;;  %v1140_v26 = vmul.f32 %v3296_v22, %v3296_v22  ;;  %2671 = vmatprep.subr.mxu1 %v3313_v34  ;;  %v3423_v43 = vand.u32 4294901760, %v3404_v29 }
 0x169   : > { %v3301_v27 = vsub.f32 %v1724_v1, %v1732_v25  ;;  %v1144_v28 = vsel %vm531_vm2, %v1140_v26, 0.0  ;;  %v1289_v56 = vsub.f32 %v3404_v29, %v3423_v43 }
 0x16a   : > { %1145 = vadd.xlane.f32.xlu1 %v1144_v28 }
 0x16b   : > { %v1736_v31 = vmul.f32 %v3301_v27, %v3301_v27 }
 0x16d   : > { %v1740_v32 = vsel %vm531_vm2, %v1736_v31, 0.0 }
 0x16e   : > { %1738 = vadd.xlane.f32.xlu1 %v1737_v30  ;;  %v1155_v30 = vld [vmem:[%s3799_s6] sm:$0xff] }
 0x16f   : > { %v3419_v42 = vand.u32 4294901760, %v1155_v30 }
 0x171   : > { %v3437_v54 = vsub.f32 %v1155_v30, %v3419_v42 }
 0x172   : > { %1741 = vadd.xlane.f32.xlu1 %v1740_v32  ;;  %v3411_v32 = vand.u32 4294901760, %v1156_v23 }
 0x174   : > { %v3427_v48 = vsub.f32 %v1156_v23, %v3411_v32 }
 0x1e7   : > { %v547_v57 = vpop.xlane.xlu1 %546 }
 0x1e8   : > { %v551_v58 = vmul.f32 0.03125, %v547_v57 }
 0x1ea   : > { %v553_v59 = vadd.f32 1e-05, %v551_v58 }
 0x1eb   : > { %v550_v60 = vpop.xlane.xlu1 %549 }
 0x1ec   : > { %2909 = vrsqrt.f32 %v553_v59  ;;  %v552_v61 = vmul.f32 0.03125, %v550_v60 }
 0x1ee   : > { %v554_v62 = vadd.f32 1e-05, %v552_v61 }
 0x1ef   : > { %v1143_v63 = vpop.xlane.xlu1 %1142 }
 0x1f0   : > { %2911 = vrsqrt.f32 %v554_v62  ;;  %v1147_v0 = vmul.f32 0.03125, %v1143_v63 }
 0x1f2   : > { %v1149_v1 = vadd.f32 1e-05, %v1147_v0 }
 0x1f3   : > { %v1146_v2 = vpop.xlane.xlu1 %1145 }
 0x1f4   : > { %v1148_v3 = vmul.f32 0.03125, %v1146_v2  ;;  %2913 = vrsqrt.f32 %v1149_v1 }
 0x1f6   : > { %v1150_v7 = vadd.f32 1e-05, %v1148_v3 }
 0x1f7   : > { %v1739_v47 = vpop.xlane.xlu1 %1738 }
 0x1f8   : > { %2915 = vrsqrt.f32 %v1150_v7  ;;  %v1743_v55 = vmul.f32 0.03125, %v1739_v47 }
 0x1f9   : > { %v2910_v4 = vpop.eup %2909 }
 0x1fa   : > { %v557_v6 = vmul.f32 %v2910_v4, %v3280_v5  ;;  %v1745_v59 = vadd.f32 1e-05, %v1743_v55 }
 0x1fb   : > { %v1742_v60 = vpop.xlane.xlu1 %1741 }
 0x1fc   : > { %v571_v8 = vsel %vm531_vm2, %v557_v6, 0  ;;  %2917 = vrsqrt.f32 %v1745_v59 }
 0x1fd   : > { %v2912_v10 = vpop.eup %2911  ;;  %v3374_v11 = vand.u32 4294901760, %v571_v8 }
 0x1fe   : > { %v558_v12 = vmul.f32 %v2912_v10, %v3284_v9  ;;  %v1157_v9 = vld [vmem:[%s3799_s6 + $0x10] sm:$0xff] }
 0x1ff   : > { %2657 = vmatprep.mubr.f32.mxu1 %v3374_v11  ;;  %v646_v13 = vsub.f32 %v571_v8, %v3374_v11  ;;  %v3400_v28 = vand.u32 4294901760, %v1157_v9  ;;  %v1752_v8 = vld [vmem:[%s3801_s8 + $0x8] sm:$0xff] }
 0x200   : > { %v574_v15 = vsel %vm531_vm2, %v558_v12, 0  ;;  %v3525_v14 = vand.u32 4294901760, %v1752_v8 }
 0x201   : > { %v3383_v5 = vand.u32 4294901760, %v574_v15  ;;  %v647_v17 = vand.u32 4294901760, %v646_v13  ;;  %v2914_v24 = vpop.eup %2913  ;;  %v3417_v38 = vsub.f32 %v1157_v9, %v3400_v28 }
 0x202   : > { %v1153_v33 = vmul.f32 %v2914_v24, %v3289_v16 }
 0x203   : > { %v3391_v19 = vsub.f32 %v574_v15, %v3383_v5  ;;  %2658 = vmatmul.mubr.f32.vlgmr.msra.gmra.mxu1 %v3383_v5  ;;  %v648_v20 = vsub.f32 %v646_v13, %v647_v17  ;;  %v3434_v52 = vand.u32 4294901760, %v3417_v38 }
 0x204   : > { %2672 = vmatpush3.msra.mxu1 %v3313_v34  ;;  %2679 = vmatprep.mubr.f32.mxu1 %v647_v17  ;;  %v1167_v51 = vsel %vm531_vm2, %v1153_v33, 0 }
 0x205   : > { %2673 = vmatprep.subr.mxu1 %v3321_v37  ;;  %v649_v25 = vand.u32 4294901760, %v648_v20  ;;  %v657_v26 = vand.u32 4294901760, %v3391_v19  ;;  %v2916_v16 = vpop.eup %2915  ;;  %v1296_v58 = vsub.f32 %v3417_v38, %v3434_v52 }
 0x206   : > { %2674 = vmatpush3.msra.mxu1 %v3321_v37  ;;  %v1154_v57 = vmul.f32 %v2916_v16, %v3296_v22  ;;  %v1290_v22 = vand.u32 4294901760, %v1289_v56 }
 0x207   : > { %2675 = vmatprep.subr.mxu1 %v3334_v41  ;;  %2646 = vmatprep.mubr.f32.mxu0 %v649_v25  ;;  %v658_v31 = vsub.f32 %v3391_v19, %v657_v26  ;;  %v1297_v62 = vand.u32 4294901760, %v1296_v58 }
 0x208   : > { %2676 = vmatpush3.msra.mxu1 %v3334_v41 }
 0x209   : > { %2677 = vmatprep.subr.mxu1 %v3349_v46  ;;  %v659_v35 = vand.u32 4294901760, %v658_v31  ;;  %v2918_v10 = vpop.eup %2917 }
 0x20a   : > { %2678 = vmatpush3.msra.mxu1 %v3349_v46 }
 0x20b   : > { %2680 = vmatmul.mubr.f32.vlgmr.msra.gmra.mxu1 %v657_v26  ;;  %2693 = vmatprep.subr.mxu1 %v3313_v34 }
 0x20c   : > { %2647 = vmatmul.mubr.f32.vlgmr.msra.gmra.mxu0 %v659_v35  ;;  %2694 = vmatpush3.msra.mxu1 %v3313_v34  ;;  %v3444_v34 = vand.u32 4294901760, %v1167_v51 }
 0x20d   : > { %2661 = vmatpush3.msra.mxu0 %v3319_v36  ;;  %2701 = vmatprep.mubr.f32.mxu1 %v3374_v11  ;;  %v3447_v36 = vand.u32 4294901760, %v3427_v48 }
 0x20e   : > { %2662 = vmatprep.subr.mxu0 %v3332_v40  ;;  %2668 = vmatprep.mubr.f32.mxu0 %v646_v13  ;;  %v3467_v61 = vsub.f32 %v1167_v51, %v3444_v34  ;;  %v1751_v13 = vld [vmem:[%s3801_s8] sm:$0xff] }
 0x20f   : > { %2695 = vmatprep.subr.mxu1 %v3321_v37  ;;  %2663 = vmatpush3.msra.mxu0 %v3332_v40  ;;  %v3457_v40 = vand.u32 4294901760, %v3437_v54  ;;  %v3535_v9 = vand.u32 4294901760, %v1751_v13 }
 0x210   : > { %2696 = vmatpush3.msra.mxu1 %v3321_v37  ;;  %2664 = vmatprep.subr.mxu0 %v3347_v45  ;;  %v1303_v37 = vsub.f32 %v3427_v48, %v3447_v36  ;;  %v1243_v0 = vand.u32 4294901760, %v3467_v61 }
 0x211   : > { %2697 = vmatprep.subr.mxu1 %v3334_v41  ;;  %2665 = vmatpush3.msra.mxu0 %v3347_v45  ;;  %v1170_v45 = vsel %vm531_vm2, %v1154_v57, 0  ;;  %v3554_v25 = vsub.f32 %v1751_v13, %v3535_v9  ;;  %v2512_v57 = vld [vmem:[%s3798_s5] ss:$0 sm:$0xff] }
 0x212   : > { %2698 = vmatpush3.msra.mxu1 %v3334_v41  ;;  %2666 = vmatprep.subr.mxu0 %v3359_v50  ;;  %v1744_v41 = vmul.f32 0.03125, %v1742_v60  ;;  %v3476_v63 = vand.u32 4294901760, %v1170_v45  ;;  %v1244_v3 = vsub.f32 %v3467_v61, %v1243_v0 }
 0x213   : > { %2699 = vmatprep.subr.mxu1 %v3349_v46  ;;  %2667 = vmatpush3.msra.mxu0 %v3359_v50  ;;  %v1310_v50 = vsub.f32 %v3437_v54, %v3457_v40  ;;  %v3575_v33 = vand.u32 4294901760, %v3554_v25 }
 0x214   : > { %2700 = vmatpush3.msra.mxu1 %v3349_v46  ;;  %2669 = vmatmul.mubr.f32.vlgmr.msra.gmra.mxu0 %v3391_v19  ;;  %v1304_v46 = vand.u32 4294901760, %v1303_v37  ;;  %v1746_v1 = vadd.f32 1e-05, %v1744_v41 }
 0x215   : > { %2682 = vmatprep.subr.mxu0 %v3329_v39  ;;  %2702 = vmatmul.mubr.f32.vlgmr.msra.gmra.mxu1 %v3383_v5  ;;  %v1311_v2 = vand.u32 4294901760, %v1310_v50  ;;  %v1906_v47 = vsub.f32 %v3554_v25, %v3575_v33 }
 0x216   : > { %2715 = vmatprep.subr.mxu1 %v1290_v22  ;;  %2683 = vmatpush3.msra.mxu0 %v3329_v39  ;;  %v3485_v39 = vsub.f32 %v1170_v45, %v3476_v63  ;;  %2919 = vrsqrt.f32 %v1746_v1 }
 0x217   : > { %2690 = vmatprep.mubr.f32.mxu0 %v3374_v11  ;;  %2716 = vmatpush3.msra.mxu1 %v1290_v22  ;;  %v1907_v51 = vand.u32 4294901760, %v1906_v47 }
 0x218   : > { %2723 = vmatprep.mubr.f32.mxu1 %v3444_v34  ;;  %2684 = vmatprep.subr.mxu0 %v3344_v44  ;;  %v1253_v4 = vand.u32 4294901760, %v3485_v39 }
 0x219   : > { %2717 = vmatprep.subr.mxu1 %v1297_v62  ;;  %2685 = vmatpush3.msra.mxu0 %v3344_v44  ;;  %v1754_v44 = vld [vmem:[%s3801_s8 + $0x18] sm:$0xff] }
 0x21a   : > { %2718 = vmatpush3.msra.mxu1 %v1297_v62  ;;  %2686 = vmatprep.subr.mxu0 %v3356_v49  ;;  %v3500_v6 = vand.u32 4294901760, %v1754_v44  ;;  %v1254_v7 = vsub.f32 %v3485_v39, %v1253_v4 }
 0x21b   : > { %2719 = vmatprep.subr.mxu1 %v1304_v46  ;;  %2687 = vmatpush3.msra.mxu0 %v3356_v49  ;;  %v1245_v49 = vand.u32 4294901760, %v1244_v3 }
 0x21c   : > { %2720 = vmatpush3.msra.mxu1 %v1304_v46  ;;  %2688 = vmatprep.subr.mxu0 %v3366_v53  ;;  %v3518_v12 = vsub.f32 %v1754_v44, %v3500_v6  ;;  %v1255_v15 = vand.u32 4294901760, %v1254_v7 }
 0x21d   : > { %2721 = vmatprep.subr.mxu1 %v1311_v2  ;;  %2689 = vmatpush3.msra.mxu0 %v3366_v53  ;;  %v1753_v53 = vld [vmem:[%s3801_s8 + $0x10] sm:$0xff] }
 0x21e   : > { %2722 = vmatpush3.msra.mxu1 %v1311_v2  ;;  %2691 = vmatmul.mubr.f32.vlgmr.msra.gmra.mxu0 %v3383_v5  ;;  %v3513_v11 = vand.u32 4294901760, %v1753_v53  ;;  %v1749_v5 = vmul.f32 %v2918_v10, %v3294_v21  ;;  %v3539_v19 = vand.u32 4294901760, %v3518_v12  ;;  %v3543_v21 = vsub.f32 %v1752_v8, %v3525_v14 }
 0x21f   : > { %2704 = vmatprep.subr.mxu0 %v3385_v18  ;;  %2724 = vmatmul.mubr.f32.vlgmr.msra.gmra.mxu1 %v3476_v63 }
 0x220   : > { %2737 = vmatprep.subr.mxu1 %v3385_v18  ;;  %2705 = vmatpush3.msra.mxu0 %v3385_v18  ;;  %v3533_v17 = vsub.f32 %v1753_v53, %v3513_v11  ;;  %v1763_v23 = vsel %vm531_vm2, %v1749_v5, 0  ;;  %v1885_v26 = vsub.f32 %v3518_v12, %v3539_v19 }
 0x221   : > { %2712 = vmatprep.mubr.f32.mxu0 %v1245_v49  ;;  %2738 = vmatpush3.msra.mxu1 %v3385_v18 }
 0x222   : > { %2745 = vmatprep.mubr.f32.mxu1 %v1243_v0  ;;  %2706 = vmatprep.subr.mxu0 %v3400_v28  ;;  %v3551_v24 = vand.u32 4294901760, %v3533_v17  ;;  %v1886_v35 = vand.u32 4294901760, %v1885_v26 }
 0x223   : > { %2739 = vmatprep.subr.mxu1 %v3400_v28  ;;  %2707 = vmatpush3.msra.mxu0 %v3400_v28  ;;  %v2920_v20 = vpop.eup %2919 }
 0x224   : > { %2740 = vmatpush3.msra.mxu1 %v3400_v28  ;;  %2708 = vmatprep.subr.mxu0 %v3411_v32  ;;  %v1750_v30 = vmul.f32 %v2920_v20, %v3301_v27  ;;  %v1892_v31 = vsub.f32 %v3533_v17, %v3551_v24 }
 0x225   : > { %2741 = vmatprep.subr.mxu1 %v3411_v32  ;;  %2709 = vmatpush3.msra.mxu0 %v3411_v32 }
 0x226   : > { %2742 = vmatpush3.msra.mxu1 %v3411_v32  ;;  %2710 = vmatprep.subr.mxu0 %v3419_v42 }
 0x227   : > { %2743 = vmatprep.subr.mxu1 %v3419_v42  ;;  %2711 = vmatpush3.msra.mxu0 %v3419_v42 }
 0x228   : > { %2744 = vmatpush3.msra.mxu1 %v3419_v42  ;;  %2713 = vmatmul.mubr.f32.vlgmr.msra.gmra.mxu0 %v1255_v15 }
 0x229   : > { %2726 = vmatprep.subr.mxu0 %v3404_v29  ;;  %2746 = vmatmul.mubr.f32.vlgmr.msra.gmra.mxu1 %v1253_v4 }
 0x22a   : > { %2759 = vmatprep.subr.mxu1 %v3385_v18  ;;  %2727 = vmatpush3.msra.mxu0 %v3404_v29  ;;  %v3562_v29 = vand.u32 4294901760, %v1763_v23 }
 0x22b   : > { %2734 = vmatprep.mubr.f32.mxu0 %v3467_v61  ;;  %2760 = vmatpush3.msra.mxu1 %v3385_v18  ;;  %v3565_v18 = vand.u32 4294901760, %v3543_v21 }
 0x22c   : > { %2767 = vmatprep.mubr.f32.mxu1 %v3444_v34  ;;  %2728 = vmatprep.subr.mxu0 %v3417_v38 }
 0x22d   : > { %2761 = vmatprep.subr.mxu1 %v3400_v28  ;;  %2729 = vmatpush3.msra.mxu0 %v3417_v38  ;;  %v1899_v27 = vsub.f32 %v3543_v21, %v3565_v18  ;;  %v1838_v38 = vsub.f32 %v1763_v23, %v3562_v29 }
 0x22e   : > { %2762 = vmatpush3.msra.mxu1 %v3400_v28  ;;  %2730 = vmatprep.subr.mxu0 %v3427_v48  ;;  %v1766_v28 = vsel %vm531_vm2, %v1750_v30, 0 }
 0x22f   : > { %2763 = vmatprep.subr.mxu1 %v3411_v32  ;;  %2731 = vmatpush3.msra.mxu0 %v3427_v48  ;;  %v3592_v48 = vand.u32 4294901760, %v1766_v28  ;;  %v1900_v16 = vand.u32 4294901760, %v1899_v27 }
 0x230   : > { %2764 = vmatpush3.msra.mxu1 %v3411_v32  ;;  %2732 = vmatprep.subr.mxu0 %v3437_v54  ;;  %v1893_v32 = vand.u32 4294901760, %v1892_v31 }
 0x231   : > { %2765 = vmatprep.subr.mxu1 %v3419_v42  ;;  %2733 = vmatpush3.msra.mxu0 %v3437_v54 }
 0x232   : > { %2766 = vmatpush3.msra.mxu1 %v3419_v42  ;;  %2735 = vmatmul.mubr.f32.vlgmr.msra.gmra.mxu0 %v3485_v39  ;;  %v1839_v42 = vand.u32 4294901760, %v1838_v38 }
 0x233   : > { %2748 = vmatprep.subr.mxu0 %v3423_v43  ;;  %2768 = vmatmul.mubr.f32.vlgmr.msra.gmra.mxu1 %v3476_v63 }
 0x234   : > { %2781 = vmatprep.subr.mxu1 %v1886_v35  ;;  %2749 = vmatpush3.msra.mxu0 %v3423_v43  ;;  %v1848_v43 = vsub.f32 %v1766_v28, %v3592_v48  ;;  %v1840_v54 = vsub.f32 %v1838_v38, %v1839_v42 }
 0x235   : > { %2756 = vmatprep.mubr.f32.mxu0 %v3444_v34  ;;  %2782 = vmatpush3.msra.mxu1 %v1886_v35 }
 0x236   : > { %2789 = vmatprep.mubr.f32.mxu1 %v3562_v29  ;;  %2750 = vmatprep.subr.mxu0 %v3434_v52  ;;  %v1841_v55 = vand.u32 4294901760, %v1840_v54 }
 0x237   : > { %2783 = vmatprep.subr.mxu1 %v1893_v32  ;;  %2751 = vmatpush3.msra.mxu0 %v3434_v52  ;;  %v1849_v52 = vand.u32 4294901760, %v1848_v43 }
 0x238   : > { %2784 = vmatpush3.msra.mxu1 %v1893_v32  ;;  %2752 = vmatprep.subr.mxu0 %v3447_v36 }
 0x239   : > { %2785 = vmatprep.subr.mxu1 %v1900_v16  ;;  %2753 = vmatpush3.msra.mxu0 %v3447_v36  ;;  %v1850_v56 = vsub.f32 %v1848_v43, %v1849_v52 }
 0x23a   : > { %2786 = vmatpush3.msra.mxu1 %v1900_v16  ;;  %2754 = vmatprep.subr.mxu0 %v3457_v40 }
 0x23b   : > { %2787 = vmatprep.subr.mxu1 %v1907_v51  ;;  %2755 = vmatpush3.msra.mxu0 %v3457_v40  ;;  %v1851_v34 = vand.u32 4294901760, %v1850_v56 }
 0x23c   : > { %2788 = vmatpush3.msra.mxu1 %v1907_v51  ;;  %2757 = vmatmul.mubr.f32.vlgmr.msra.gmra.mxu0 %v3476_v63 }
 0x23d   : > { %2770 = vmatprep.subr.mxu0 %v3500_v6  ;;  %2790 = vmatmul.mubr.f32.vlgmr.msra.gmra.mxu1 %v3592_v48 }
 0x23e   : > { %2803 = vmatprep.subr.mxu1 %v3500_v6  ;;  %2771 = vmatpush3.msra.mxu0 %v3500_v6 }
 0x23f   : > { %2778 = vmatprep.mubr.f32.mxu0 %v1841_v55  ;;  %2804 = vmatpush3.msra.mxu1 %v3500_v6 }
 0x240   : > { %2811 = vmatprep.mubr.f32.mxu1 %v1839_v42  ;;  %2772 = vmatprep.subr.mxu0 %v3513_v11 }
 0x241   : > { %2805 = vmatprep.subr.mxu1 %v3513_v11  ;;  %2773 = vmatpush3.msra.mxu0 %v3513_v11 }
 0x242   : > { %2806 = vmatpush3.msra.mxu1 %v3513_v11  ;;  %2774 = vmatprep.subr.mxu0 %v3525_v14 }
 0x243   : > { %2807 = vmatprep.subr.mxu1 %v3525_v14  ;;  %2775 = vmatpush3.msra.mxu0 %v3525_v14 }
 0x244   : > { %2808 = vmatpush3.msra.mxu1 %v3525_v14  ;;  %2776 = vmatprep.subr.mxu0 %v3535_v9 }
 0x245   : > { %2809 = vmatprep.subr.mxu1 %v3535_v9  ;;  %2777 = vmatpush3.msra.mxu0 %v3535_v9 }
 0x246   : > { %2810 = vmatpush3.msra.mxu1 %v3535_v9  ;;  %2779 = vmatmul.mubr.f32.vlgmr.msra.gmra.mxu0 %v1851_v34 }
 0x247   : > { %2792 = vmatprep.subr.mxu0 %v3518_v12  ;;  %2812 = vmatmul.mubr.f32.vlgmr.msra.gmra.mxu1 %v1849_v52 }
 0x248   : > { %2825 = vmatprep.subr.mxu1 %v3500_v6  ;;  %2793 = vmatpush3.msra.mxu0 %v3518_v12 }
 0x249   : > { %2800 = vmatprep.mubr.f32.mxu0 %v1838_v38  ;;  %2826 = vmatpush3.msra.mxu1 %v3500_v6 }
 0x24a   : > { %2833 = vmatprep.mubr.f32.mxu1 %v3562_v29  ;;  %2794 = vmatprep.subr.mxu0 %v3533_v17 }
 0x24b   : > { %2827 = vmatprep.subr.mxu1 %v3513_v11  ;;  %2795 = vmatpush3.msra.mxu0 %v3533_v17 }
 0x24c   : > { %2828 = vmatpush3.msra.mxu1 %v3513_v11  ;;  %2796 = vmatprep.subr.mxu0 %v3543_v21 }
 0x24d   : > { %2829 = vmatprep.subr.mxu1 %v3525_v14  ;;  %2797 = vmatpush3.msra.mxu0 %v3543_v21 }
 0x24e   : > { %2830 = vmatpush3.msra.mxu1 %v3525_v14  ;;  %2798 = vmatprep.subr.mxu0 %v3554_v25 }
 0x24f   : > { %2831 = vmatprep.subr.mxu1 %v3535_v9  ;;  %2799 = vmatpush3.msra.mxu0 %v3554_v25 }
 0x250   : > { %2832 = vmatpush3.msra.mxu1 %v3535_v9  ;;  %2801 = vmatmul.mubr.f32.vlgmr.msra.gmra.mxu0 %v1848_v43 }
 0x251   : > { %2814 = vmatprep.subr.mxu0 %v3539_v19  ;;  %2834 = vmatmul.mubr.f32.vlgmr.msra.gmra.mxu1 %v3592_v48 }
 0x252   : > { %2815 = vmatpush3.msra.mxu0 %v3539_v19  ;;  %2822 = vmatprep.mubr.f32.mxu0 %v3562_v29 }
 0x253   : > { %2816 = vmatprep.subr.mxu0 %v3551_v24 }
 0x254   : > { %2817 = vmatpush3.msra.mxu0 %v3551_v24 }
 0x255   : > { %2818 = vmatprep.subr.mxu0 %v3565_v18 }
 0x256   : > { %2819 = vmatpush3.msra.mxu0 %v3565_v18 }
 0x257   : > { %2820 = vmatprep.subr.mxu0 %v3575_v33 }
 0x258   : > { %2821 = vmatpush3.msra.mxu0 %v3575_v33 }
 0x259   : > { %2823 = vmatmul.mubr.f32.vlgmr.msra.gmra.mxu0 %v3592_v48 }
 0x2c3   : > { %v2659_v58 = vpop.f32.mrf.mxu1 }
 0x2c5   : > { %v752_v37 = vpop.f32.mrf.mxu1 }
 0x2cb   : > { %v2681_v61 = vpop.f32.mrf.mxu1 }
 0x2cc   : > { %v2648_v36 = vpop.f32.mrf.mxu0 }
 0x2cd   : > { %v662_v59 = vadd.f32 %v2648_v36, %v2512_v57  ;;  %v922_v46 = vpop.f32.mrf.mxu1 }
 0x2ce   : > { %v651_v40 = vpop.f32.mrf.mxu0 }
 0x2cf   : > { %v652_v22 = vadd.f32 %v2512_v57, %v651_v40  ;;  %v759_v45 = vadd.f32 %v2659_v58, %v662_v59 }
 0x2d1   : > { %v753_v50 = vadd.f32 %v752_v37, %v652_v22 }
 0x2d4   : > { %v2670_v60 = vpop.f32.mrf.mxu0 }
 0x2d5   : > { %v846_v62 = vadd.f32 %v2670_v60, %v759_v45  ;;  %v2703_v1 = vpop.f32.mrf.mxu1 }
 0x2d6   : > { %v838_v41 = vpop.f32.mrf.mxu0 }
 0x2d7   : > { %v839_v63 = vadd.f32 %v838_v41, %v753_v50  ;;  %v931_v0 = vadd.f32 %v2681_v61, %v846_v62  ;;  %v1094_v6 = vpop.f32.mrf.mxu1 }
 0x2d9   : > { %v923_v3 = vadd.f32 %v922_v46, %v839_v63 }
 0x2de   : > { %v2692_v2 = vpop.f32.mrf.mxu0 }
 0x2df   : > { %v1020_v39 = vadd.f32 %v2692_v2, %v931_v0 }
 0x2e0   : > { %v1013_v44 = vpop.f32.mrf.mxu0 }
 0x2e1   : > { %v1101_v4 = vadd.f32 %v2703_v1, %v1020_v39  ;;  %v1014_v49 = vadd.f32 %v1013_v44, %v923_v3 }
 0x2e3   : > { %1105 = vst.msk [vmem:[%s436_s26 + $0x8] sm:$0xff] %vm531_vm2, %v1101_v4  ;;  %v1095_v53 = vadd.f32 %v1094_v6, %v1014_v49 }
 0x2e5   : > { %1104 = vst.msk [vmem:[%s436_s26] sm:$0xff] %vm531_vm2, %v1095_v53 }
 0x2e6   : > { %2986 = shalt.err (!%p2983_p1)
}
 0x2e7   : > { %s2987_s16 = scalar_lea.hbm %s3664_s20, 256  ;;  %s2991_s1 = scalar_lea.hbm %s3803_s10, 512 }
 0x2e8   : > { %p2988_p2 = scmp.ne.s32.totalorder %s3664_s20, %s2987_s16  ;;  %p2992_p9 = scmp.lt.s32.totalorder %s3664_s20, %s3803_s10 }
 0x2e9   : > { %p2993_p5 = scmp.lt.s32.totalorder %s2991_s1, %s2987_s16 }
 0x2ea   : > { %p2989_p3 = pnand %p2988_p2, %p3831_p12 }
 0x2eb   : > { %p2994_p6 = por %p2993_p5, %p2992_p9 }
 0x2ec   : > { %p2990_p13 = pneg %p2989_p3 }
 0x2ee   : > { %p2995_p10 = pnand %p2994_p6, %p2990_p13 }
 0x2f0   : > { %2998 = shalt.err (!%p2995_p10)
}
 0x2f1   : > { %s3810_s0 = smov 128   ;;  %s3103_s2 = smov 8   ;;  %v2714_v7 = vpop.f32.mrf.mxu0  ;;  %v2513_v8 = vld [vmem:[%s3800_s7] ss:$0 sm:$0xff]  ;;  %v2725_v10 = vpop.f32.mrf.mxu1 }
 0x2f2   : > { %2844 = dma.vmem_to_hbm [thread:$0]  (%p3831_p12), %s3666_s17, 256, %s3664_s20, %s3669_s29, %s3810_s0, %s3810_s0, %s3103_s2   ;;  %v1258_v12 = vadd.f32 %v2714_v7, %v2513_v8 }
 0x2f3   : > { %v1247_v11 = vpop.f32.mrf.mxu0  ;;  %v1348_v15 = vpop.f32.mrf.mxu1  ;;  %s2303_s3 = sand.u32 1, %s3192_s25   ;;  %s443_s4 = scalar_lea.vmem [#allocation8], %s3653_s18 }
 0x2f4   : > { %v1248_v14 = vadd.f32 %v2513_v8, %v1247_v11  ;;  %v1355_v5 = vadd.f32 %v2725_v10, %v1258_v12  ;;  %s2338_s17 = sshll.u32 %s443_s4, 4  ;;  %s3705_s16 = scalar_lea.hbm %s3804_s11, %s3656_s28  ;;  %s3707_s17 = int_to_ptr.vmem [resolvable:$true] %s2338_s17 }
 0x2f5   : > { %v2736_v13 = vpop.f32.mrf.mxu0  ;;  %v2747_v17 = vpop.f32.mrf.mxu1  ;;  %s3710_s25 = scalar_lea.sflag [#allocation9], %s2303_s3  ;;  %s2999_s15 = scalar_lea.vmem %s3707_s17, 256 }
 0x2f6   : > { %v1442_v19 = vadd.f32 %v2736_v13, %v1355_v5  ;;  %v1349_v21 = vadd.f32 %v1348_v15, %v1248_v14  ;;  %p3000_p4 = scmp.ne.s32.totalorder %s3707_s17, %s2999_s15  ;;  %s3104_s1 = smov [#allocation8]  }
 0x2f7   : > { %v1434_v9 = vpop.f32.mrf.mxu0  ;;  %v1518_v23 = vpop.f32.mrf.mxu1  ;;  %s3003_s19 = sshll.u32 %s3104_s1, 4  ;;  %s3004_s19 = int_to_ptr.vmem [resolvable:$false] %s3003_s19 }
 0x2f8   : > { %v1435_v20 = vadd.f32 %v1434_v9, %v1349_v21  ;;  %v1527_v24 = vadd.f32 %v2747_v17, %v1442_v19  ;;  %p3001_p7 = pnand %p3000_p4, %p3831_p12  ;;  %s3005_s26 = scalar_lea.vmem %s3004_s19, 512 }
 0x2f9   : > { %v2769_v25 = vpop.f32.mrf.mxu1  ;;  %p3006_p11 = scmp.lt.s32.totalorder %s3707_s17, %s3004_s19  ;;  %p3007_p0 = scmp.lt.s32.totalorder %s3005_s26, %s2999_s15 }
 0x2fa   : > { %v1519_v18 = vadd.f32 %v1518_v23, %v1435_v20  ;;  %p3002_p8 = pneg %p3001_p7 }
 0x2fb   : > { %v1690_v35 = vpop.f32.mrf.mxu1  ;;  %p3008_p1 = por %p3007_p0, %p3006_p11 }
 0x2fc   : > { %v2758_v26 = vpop.f32.mrf.mxu0 }
 0x2fd   : > { %v1616_v29 = vadd.f32 %v2758_v26, %v1527_v24  ;;  %p3009_p2 = pnand %p3008_p1, %p3002_p8 }
 0x2fe   : > { %v1609_v30 = vpop.f32.mrf.mxu0 }
 0x2ff   : > { %v1697_v31 = vadd.f32 %v2769_v25, %v1616_v29  ;;  %v1610_v33 = vadd.f32 %v1609_v30, %v1519_v18 }
 0x301   : > { %1701 = vst.msk [vmem:[%s443_s4 + $0x8] sm:$0xff] %vm531_vm2, %v1697_v31  ;;  %v1691_v27 = vadd.f32 %v1690_v35, %v1610_v33 }
 0x303   : > { %1700 = vst.msk [vmem:[%s443_s4] sm:$0xff] %vm531_vm2, %v1691_v27 }
 0x304   : > { %3012 = shalt.err (!%p3009_p2)
}
 0x305   : > { %s3013_s3 = scalar_lea.hbm %s3705_s16, 256  ;;  %s3017_s29 = scalar_lea.hbm %s3804_s11, 512 }
 0x306   : > { %p3014_p3 = scmp.ne.s32.totalorder %s3705_s16, %s3013_s3  ;;  %p3018_p5 = scmp.lt.s32.totalorder %s3705_s16, %s3804_s11 }
 0x307   : > { %p3019_p6 = scmp.lt.s32.totalorder %s3017_s29, %s3013_s3 }
 0x308   : > { %p3015_p13 = pnand %p3014_p3, %p3831_p12 }
 0x309   : > { %p3020_p10 = por %p3019_p6, %p3018_p5 }
 0x30a   : > { %p3016_p9 = pneg %p3015_p13 }
 0x30c   : > { %p3021_p4 = pnand %p3020_p10, %p3016_p9 }
 0x30e   : > { %3024 = shalt.err (!%p3021_p4)
}
 0x30f   : > { %s3832_s15 = smov 128   ;;  %v2780_v28 = vpop.f32.mrf.mxu0  ;;  %v2514_v38 = vld [vmem:[%s3802_s9] ss:$0 sm:$0xff]  ;;  %v2791_v32 = vpop.f32.mrf.mxu1  ;;  %s450_s0 = scalar_lea.vmem [#allocation10], %s3653_s18 }
 0x310   : > { %2845 = dma.vmem_to_hbm [thread:$0]  (%p3831_p12), %s3707_s17, 256, %s3705_s16, %s3710_s25, %s3832_s15, %s3832_s15, %s3103_s2   ;;  %v1854_v48 = vadd.f32 %v2780_v28, %v2514_v38 }
 0x311   : > { %v1843_v47 = vpop.f32.mrf.mxu0  ;;  %v1944_v51 = vpop.f32.mrf.mxu1  ;;  %s2354_s17 = sshll.u32 %s450_s0, 4  ;;  %s3747_s4 = scalar_lea.hbm %s3805_s12, %s3656_s28  ;;  %s3741_s17 = int_to_ptr.vmem [resolvable:$true] %s2354_s17 }
 0x312   : > { %v1844_v16 = vadd.f32 %v2514_v38, %v1843_v47  ;;  %v1951_v43 = vadd.f32 %v2791_v32, %v1854_v48  ;;  %s3025_s18 = scalar_lea.vmem %s3741_s17, 256  ;;  %s3105_s20 = smov [#allocation10]  }
 0x313   : > { %v2802_v42 = vpop.f32.mrf.mxu0  ;;  %v2813_v54 = vpop.f32.mrf.mxu1  ;;  %p3026_p7 = scmp.ne.s32.totalorder %s3741_s17, %s3025_s18  ;;  %s3029_s29 = sshll.u32 %s3105_s20, 4  ;;  %s3030_s29 = int_to_ptr.vmem [resolvable:$false] %s3029_s29 }
 0x314   : > { %v2038_v55 = vadd.f32 %v2802_v42, %v1951_v43  ;;  %v1945_v56 = vadd.f32 %v1944_v51, %v1844_v16  ;;  %s3031_s1 = scalar_lea.vmem %s3030_s29, 512  ;;  %p3032_p0 = scmp.lt.s32.totalorder %s3741_s17, %s3030_s29 }
 0x315   : > { %v2030_v52 = vpop.f32.mrf.mxu0  ;;  %v2114_v36 = vpop.f32.mrf.mxu1  ;;  %p3027_p8 = pnand %p3026_p7, %p3831_p12  ;;  %p3033_p1 = scmp.lt.s32.totalorder %s3031_s1, %s3025_s18 }
 0x316   : > { %v2031_v34 = vadd.f32 %v2030_v52, %v1945_v56  ;;  %v2123_v57 = vadd.f32 %v2813_v54, %v2038_v55 }
 0x317   : > { %v2835_v58 = vpop.f32.mrf.mxu1  ;;  %p3028_p11 = pneg %p3027_p8  ;;  %p3034_p2 = por %p3033_p1, %p3032_p0 }
 0x318   : > { %v2115_v60 = vadd.f32 %v2114_v36, %v2031_v34 }
 0x319   : > { %v2824_v40 = vpop.f32.mrf.mxu0  ;;  %v2286_v61 = vpop.f32.mrf.mxu1  ;;  %p3035_p3 = pnand %p3034_p2, %p3028_p11 }
 0x31a   : > { %v2212_v59 = vadd.f32 %v2824_v40, %v2123_v57 }
 0x31b   : > { %v2205_v22 = vpop.f32.mrf.mxu0 }
 0x31c   : > { %v2293_v37 = vadd.f32 %v2835_v58, %v2212_v59  ;;  %v2206_v45 = vadd.f32 %v2205_v22, %v2115_v60 }
 0x31e   : > { %2297 = vst.msk [vmem:[%s450_s0 + $0x8] sm:$0xff] %vm531_vm2, %v2293_v37  ;;  %v2287_v41 = vadd.f32 %v2286_v61, %v2206_v45 }
 0x320   : > { %2296 = vst.msk [vmem:[%s450_s0] sm:$0xff] %vm531_vm2, %v2287_v41 }
 0x321   : > { %3038 = shalt.err (!%p3035_p3)
}
 0x322   : > { %s3039_s28 = scalar_lea.hbm %s3747_s4, 256  ;;  %s3043_s0 = scalar_lea.hbm %s3805_s12, 512 }
 0x323   : > { %p3040_p13 = scmp.ne.s32.totalorder %s3747_s4, %s3039_s28  ;;  %p3044_p6 = scmp.lt.s32.totalorder %s3747_s4, %s3805_s12 }
 0x324   : > { %p3045_p10 = scmp.lt.s32.totalorder %s3043_s0, %s3039_s28 }
 0x325   : > { %p3041_p9 = pnand %p3040_p13, %p3831_p12 }
 0x326   : > { %p3046_p4 = por %p3045_p10, %p3044_p6 }
 0x327   : > { %p3042_p5 = pneg %p3041_p9 }
 0x329   : > { %p3047_p7 = pnand %p3046_p4, %p3042_p5 }
 0x32b   : > { %3050 = shalt.err (!%p3047_p7)
}
 0x32c   : > { %2846 = dma.vmem_to_hbm [thread:$0]  (%p3831_p12), %s3741_s17, 256, %s3747_s4, %s3710_s25, %s3832_s15, %s3832_s15, %s3103_s2  }
 0x32d PF: > { %p2871_p8 = scmp.ge.s32.totalorder %s3097_s24, 2  ;;  %s2369_s18 = sand.u32 1, %s3085_s21  }
 0x32e   : > { %p3833_p11 = scmp.ne.s32.totalorder %s3818_s14, 0  ;;  %s2370_s20 = scalar_lea.sflag [#allocation4], %s2369_s18 }
 0x330   : > { %p2858_p0 = pnand %p2871_p8, %p3833_p11 }
 0x332   : > { %p2859_p1 = pneg %p2858_p0 }
 0x334   : > { %3076 = dma.done.wait (%p2859_p1), %s2370_s20, 256  }
 0x335   : > { %3078 = vsyncadd (%p2859_p1), %s2370_s20, 4294967040  ;;  %s3834_s13 = sadd.s32 4294967294, %s3097_s24  }
 0x336   : > { %s2378_s29 = sand.u32 1, %s3834_s13  }
 0x337   : > { %s2379_s1 = scalar_lea.sflag [#allocation9], %s2378_s29 }
 0x338   : > { %3080 = dma.done.wait (%p2859_p1), %s2379_s1, 512  }
 0x339   : > { %3082 = vsyncadd (%p2859_p1), %s2379_s1, 4294966784  ;;  %p28_p12 = scmp.ge.s32.totalorder %s3196_s27, 4   ;;  %s3835_s21 = smov %s3089_s22 }
 0x33a   : > { %s3836_s22 = smov %s3093_s23  ;;  %s3837_s23 = smov %s3209_s30 }
 0x33b   : > { %s3838_s24 = smov %s3196_s27  ;;  %30 = sbr.rel (!%p28_p12) target bundleno = 13 (0xd), region = 136 }
 0x340   :  { %2393 = vsyncpa [#allocation3], 1 }
 0x341   :  { %2395 = vsyncpa [#allocation3 + $0x1], 1 }
 0x342   :  { %2396 = vsyncpa [#allocation6], 1 }
 0x343   :  { %2397 = vsyncpa [#allocation4], 1 }
 0x344   :  { %2399 = vsyncpa [#allocation4 + $0x1], 1 }
 0x345   :  { %2400 = vsyncpa [#allocation9], 1 }
 0x346   :  { %2402 = vsyncpa [#allocation9 + $0x1], 1 }

</bundles_post_ra>
